<compile_context>
chip_gen: v7x
topology: tpu7x:2x2x1
jax: 0.10.0
libtpu: 0.0.40
codegen_flags: <defaults>
</compile_context>

<pallas_src>
import functools

import jax
import jax.numpy as jnp
from jax.experimental import pallas as pl
from jax.experimental.pallas import tpu as pltpu


_VMEM = pl.BlockSpec(memory_space=pltpu.MemorySpace.VMEM)


# ----------------------------- Pallas kernels ------------------------------ #

def _conv_relu_pool_kernel(p_ref, w_ref, b_ref, o_ref, *, mp_pad):
    """Fused conv (as matmul) + bias + ReLU + 2x2 max-pool.

    p: (K, 4*mp_pad)   im2col patches, columns grouped by pool phase q=0..3
    w: (OC, K)         flattened conv weight (c, kh, kw order)
    b: (OC, 1)
    o: (OC, mp_pad)    pooled output, column m = b*PH*PW + ph*PW + pw
    """
    # Lane-dense MXU product: large dim (4*mp_pad, multiple of 128) on lanes.
    y = jnp.dot(w_ref[...], p_ref[...], preferred_element_type=jnp.float32)
    y = jnp.maximum(y + b_ref[...], 0.0)                   # bias + ReLU (f32 VPU)
    # 2x2 max-pool = max over the four pool-phase lane blocks (aligned slices).
    o_ref[...] = jnp.maximum(
        jnp.maximum(y[:, 0 * mp_pad:1 * mp_pad], y[:, 1 * mp_pad:2 * mp_pad]),
        jnp.maximum(y[:, 2 * mp_pad:3 * mp_pad], y[:, 3 * mp_pad:4 * mp_pad]),
    ).astype(o_ref.dtype)


def _fc_stack_kernel(x_ref, w1_ref, b1_ref, w2_ref, b2_ref, w3_ref, b3_ref,
                     o_ref):
    """Fused fc1+ReLU -> fc2+ReLU -> fc3; intermediates stay in VMEM/vregs."""
    h = jnp.dot(x_ref[...], w1_ref[...],
                preferred_element_type=jnp.float32) + b1_ref[...]
    h = jnp.maximum(h, 0.0)
    h = jnp.dot(h, w2_ref[...],
                preferred_element_type=jnp.float32) + b2_ref[...]
    h = jnp.maximum(h, 0.0)
    o_ref[...] = (jnp.dot(h, w3_ref[...],
                          preferred_element_type=jnp.float32)
                  + b3_ref[...]).astype(o_ref.dtype)


# ------------------------------- Layer wrappers ----------------------------- #

def conv_relu_pool(x, w_flat, b_col, *, KH, KW):
    """Conv(valid, stride 1) + ReLU + MaxPool2d(2) via one fused Pallas kernel.

    x:      (B, C, H, W) f32
    w_flat: (OC, C*KH*KW) f32   (PyTorch weight flattened in (c, kh, kw) order)
    b_col:  (OC, 1) f32
    returns (B, OC, PH, PW) f32
    """
    B, C, H, W = x.shape
    OC, K = w_flat.shape
    assert K == C * KH * KW
    OH, OW = H - KH + 1, W - KW + 1
    assert OH % 2 == 0 and OW % 2 == 0
    PH, PW = OH // 2, OW // 2
    Mp = B * PH * PW
    mp_pad = max(128, -(-Mp // 128) * 128)   # pad pooled-column count to lanes

    # --- im2col (single XLA fusion), transposed & grouped by pool phase ---
    # cols[t][b, c, oh, ow] = x[b, c, oh+kh, ow+kw],  t = kh*KW + kw
    cols = [x[:, :, kh:kh + OH, kw:kw + OW]
            for kh in range(KH) for kw in range(KW)]
    p = jnp.stack(cols, axis=2)                       # (B, C, KH*KW, OH, OW)
    p = p.reshape(B, C, KH * KW, PH, 2, PW, 2)        # split oh=(ph,dh), ow=(pw,dw)
    p = p.transpose(4, 6, 1, 2, 0, 3, 5)              # (dh, dw, c, t, b, ph, pw)
    p = p.reshape(4, K, Mp)                           # (q, k, m)
    p = jnp.pad(p, ((0, 0), (0, 0), (0, mp_pad - Mp)))
    p = p.transpose(1, 0, 2).reshape(K, 4 * mp_pad)   # (K, 4*mp_pad)

    flops = 2 * OC * K * 4 * mp_pad + 6 * OC * 4 * mp_pad
    bytes_accessed = 4 * (p.size + w_flat.size + b_col.size + OC * mp_pad)

    out = pl.pallas_call(
        functools.partial(_conv_relu_pool_kernel, mp_pad=mp_pad),
        out_shape=jax.ShapeDtypeStruct((OC, mp_pad), jnp.float32),
        in_specs=[_VMEM, _VMEM, _VMEM],
        out_specs=_VMEM,
        cost_estimate=pl.CostEstimate(flops=flops, transcendentals=0,
                                      bytes_accessed=bytes_accessed),
    )(p, w_flat, b_col)

    # (OC, mp_pad) -> drop padding -> (B, OC, PH, PW)
    out = out[:, :Mp].reshape(OC, B, PH, PW).transpose(1, 0, 2, 3)
    return out


def fc_stack(x, w1, b1, w2, b2, w3, b3):
    """fc1+ReLU -> fc2+ReLU -> fc3 as a single Pallas kernel."""
    B = x.shape[0]
    N = w3.shape[1]
    flops = 2 * B * (w1.shape[0] * w1.shape[1]
                     + w2.shape[0] * w2.shape[1]
                     + w3.shape[0] * w3.shape[1])
    bytes_accessed = 4 * (x.size + w1.size + b1.size + w2.size + b2.size
                          + w3.size + b3.size + B * N)
    return pl.pallas_call(
        _fc_stack_kernel,
        out_shape=jax.ShapeDtypeStruct((B, N), jnp.float32),
        in_specs=[_VMEM] * 7,
        out_specs=_VMEM,
        cost_estimate=pl.CostEstimate(flops=flops, transcendentals=0,
                                      bytes_accessed=bytes_accessed),
    )(x, w1, b1, w2, b2, w3, b3)


# --------------------------------- Parameters ------------------------------- #

def init_params(key):
    """Deterministic LeNet5 parameters in PyTorch-native layout."""
    def uniform(key, shape, fan_in):
        bound = 1.0 / jnp.sqrt(float(fan_in))
        return jax.random.uniform(key, shape, jnp.float32, -bound, bound)

    ks = jax.random.split(key, 10)
    return {
        "w1": uniform(ks[0], (6, 3, 5, 5), 3 * 5 * 5),
        "b1": uniform(ks[1], (6,), 3 * 5 * 5),
        "w2": uniform(ks[2], (16, 6, 5, 5), 6 * 5 * 5),
        "b2": uniform(ks[3], (16,), 6 * 5 * 5),
        "fc1_w": uniform(ks[4], (120, 400), 400),
        "fc1_b": uniform(ks[5], (120,), 400),
        "fc2_w": uniform(ks[6], (84, 120), 120),
        "fc2_b": uniform(ks[7], (84,), 120),
        "fc3_w": uniform(ks[8], (10, 84), 84),
        "fc3_b": uniform(ks[9], (10,), 84),
    }


def prepare_params(p):
    """One-time layout conversion to kernel-friendly shapes (done outside jit)."""
    return {
        "w1": p["w1"].reshape(6, 3 * 5 * 5),      # (OC, C*KH*KW)
        "b1": p["b1"].reshape(6, 1),
        "w2": p["w2"].reshape(16, 6 * 5 * 5),
        "b2": p["b2"].reshape(16, 1),
        "fc1_w": p["fc1_w"].T,                    # (400, 120)
        "fc1_b": p["fc1_b"].reshape(1, 120),
        "fc2_w": p["fc2_w"].T,                    # (120, 84)
        "fc2_b": p["fc2_b"].reshape(1, 84),
        "fc3_w": p["fc3_w"].T,                    # (84, 10)
        "fc3_b": p["fc3_b"].reshape(1, 10),
    }


# --------------------------------- Forward ---------------------------------- #

def lenet5_forward(x, params):
    # layer1: conv(3->6, k5) + ReLU + maxpool2  (one fused kernel)
    out = conv_relu_pool(x, params["w1"], params["b1"], KH=5, KW=5)
    # layer2: conv(6->16, k5) + ReLU + maxpool2 (one fused kernel)
    out = conv_relu_pool(out, params["w2"], params["b2"], KH=5, KW=5)
    # flatten in NCHW order (same as torch .view on contiguous NCHW)
    out = out.reshape(out.shape[0], -1)                     # (B, 400)
    # fused FC tail (fc1+ReLU+fc2+ReLU+fc3) in one kernel
    return fc_stack(out, params["fc1_w"], params["fc1_b"],
                    params["fc2_w"], params["fc2_b"],
                    params["fc3_w"], params["fc3_b"])       # (B, 10)


if __name__ == "__main__":
    key = jax.random.PRNGKey(0)
    kx, kp = jax.random.split(key)
    # LeNet5 geometry requires 3x32x32 input (fc1 expects 16*5*5 features).
    x = jax.random.normal(kx, (2, 3, 32, 32), dtype=jnp.float32)
    params = prepare_params(init_params(kp))   # layout conversion done once

    out = jax.jit(lenet5_forward)(x, params)
    out = jax.block_until_ready(out)
    assert out.shape == (2, 10) and out.dtype == jnp.float32
    print("KERNEL_OK")
</pallas_src>

<mosaic_0001>
module attributes {stable_mosaic.version = 11 : i64} {
  func.func @_conv_relu_pool_kernel(%arg0: memref<75x2048xf32, #tpu.memory_space<vmem>>, %arg1: memref<6x75xf32, #tpu.memory_space<vmem>>, %arg2: memref<6x1xf32, #tpu.memory_space<vmem>>, %arg3: memref<6x512xf32, #tpu.memory_space<vmem>>) attributes {dimension_semantics = [], scalar_prefetch = 0 : i64, scratch_operands = 0 : i64, tpu.core_type = #tpu.core_type<tc>} {
    %c0 = arith.constant 0 : index
    %c0_0 = arith.constant 0 : index
    %0 = vector.load %arg1[%c0, %c0_0] : memref<6x75xf32, #tpu.memory_space<vmem>>, vector<6x75xf32>
    %c0_1 = arith.constant 0 : index
    %c0_2 = arith.constant 0 : index
    %1 = vector.load %arg0[%c0_1, %c0_2] : memref<75x2048xf32, #tpu.memory_space<vmem>>, vector<75x2048xf32>
    %cst = arith.constant dense<0.000000e+00> : vector<6x2048xf32>
    %2 = tpu.matmul %0, %1, %cst {dimension_numbers = #tpu.dot_dimension_numbers<[1], [0], [0], [1], [0, 0, 1, 1], [], []>} : vector<6x75xf32>, vector<75x2048xf32>, vector<6x2048xf32> -> vector<6x2048xf32>
    %c0_3 = arith.constant 0 : index
    %c0_4 = arith.constant 0 : index
    %3 = vector.load %arg2[%c0_3, %c0_4] : memref<6x1xf32, #tpu.memory_space<vmem>>, vector<6x1xf32>
    %4 = vector.broadcast %3 : vector<6x1xf32> to vector<6x2048xf32>
    %5 = arith.addf %2, %4 : vector<6x2048xf32>
    %cst_5 = arith.constant 0.000000e+00 : f32
    %6 = vector.broadcast %cst_5 : f32 to vector<6x2048xf32>
    %7 = arith.maximumf %5, %6 : vector<6x2048xf32>
    %8 = vector.extract_strided_slice %7 {offsets = [0, 0], sizes = [6, 512], strides = [1, 1]} : vector<6x2048xf32> to vector<6x512xf32>
    %9 = vector.extract_strided_slice %7 {offsets = [0, 512], sizes = [6, 512], strides = [1, 1]} : vector<6x2048xf32> to vector<6x512xf32>
    %10 = arith.maximumf %8, %9 : vector<6x512xf32>
    %11 = vector.extract_strided_slice %7 {offsets = [0, 1024], sizes = [6, 512], strides = [1, 1]} : vector<6x2048xf32> to vector<6x512xf32>
    %12 = vector.extract_strided_slice %7 {offsets = [0, 1536], sizes = [6, 512], strides = [1, 1]} : vector<6x2048xf32> to vector<6x512xf32>
    %13 = arith.maximumf %11, %12 : vector<6x512xf32>
    %14 = arith.maximumf %10, %13 : vector<6x512xf32>
    %c0_6 = arith.constant 0 : index
    %c0_7 = arith.constant 0 : index
    %15 = vector.load %arg3[%c0_6, %c0_7] : memref<6x512xf32, #tpu.memory_space<vmem>>, vector<6x512xf32>
    tpu.vector_store %arg3[%c0_6, %c0_7], %14 {strides = array<i32>} : memref<6x512xf32, #tpu.memory_space<vmem>>, vector<6x512xf32>,
    return
  }
}

module attributes {stable_mosaic.version = 11 : i64} {
  func.func @_conv_relu_pool_kernel(%arg0: memref<150x512xf32, #tpu.memory_space<vmem>>, %arg1: memref<16x150xf32, #tpu.memory_space<vmem>>, %arg2: memref<16x1xf32, #tpu.memory_space<vmem>>, %arg3: memref<16x128xf32, #tpu.memory_space<vmem>>) attributes {dimension_semantics = [], scalar_prefetch = 0 : i64, scratch_operands = 0 : i64, tpu.core_type = #tpu.core_type<tc>} {
    %c0 = arith.constant 0 : index
    %c0_0 = arith.constant 0 : index
    %0 = vector.load %arg1[%c0, %c0_0] : memref<16x150xf32, #tpu.memory_space<vmem>>, vector<16x150xf32>
    %c0_1 = arith.constant 0 : index
    %c0_2 = arith.constant 0 : index
    %1 = vector.load %arg0[%c0_1, %c0_2] : memref<150x512xf32, #tpu.memory_space<vmem>>, vector<150x512xf32>
    %cst = arith.constant dense<0.000000e+00> : vector<16x512xf32>
    %2 = tpu.matmul %0, %1, %cst {dimension_numbers = #tpu.dot_dimension_numbers<[1], [0], [0], [1], [0, 0, 1, 1], [], []>} : vector<16x150xf32>, vector<150x512xf32>, vector<16x512xf32> -> vector<16x512xf32>
    %c0_3 = arith.constant 0 : index
    %c0_4 = arith.constant 0 : index
    %3 = vector.load %arg2[%c0_3, %c0_4] : memref<16x1xf32, #tpu.memory_space<vmem>>, vector<16x1xf32>
    %4 = vector.broadcast %3 : vector<16x1xf32> to vector<16x512xf32>
    %5 = arith.addf %2, %4 : vector<16x512xf32>
    %cst_5 = arith.constant 0.000000e+00 : f32
    %6 = vector.broadcast %cst_5 : f32 to vector<16x512xf32>
    %7 = arith.maximumf %5, %6 : vector<16x512xf32>
    %8 = vector.extract_strided_slice %7 {offsets = [0, 0], sizes = [16, 128], strides = [1, 1]} : vector<16x512xf32> to vector<16x128xf32>
    %9 = vector.extract_strided_slice %7 {offsets = [0, 128], sizes = [16, 128], strides = [1, 1]} : vector<16x512xf32> to vector<16x128xf32>
    %10 = arith.maximumf %8, %9 : vector<16x128xf32>
    %11 = vector.extract_strided_slice %7 {offsets = [0, 256], sizes = [16, 128], strides = [1, 1]} : vector<16x512xf32> to vector<16x128xf32>
    %12 = vector.extract_strided_slice %7 {offsets = [0, 384], sizes = [16, 128], strides = [1, 1]} : vector<16x512xf32> to vector<16x128xf32>
    %13 = arith.maximumf %11, %12 : vector<16x128xf32>
    %14 = arith.maximumf %10, %13 : vector<16x128xf32>
    %c0_6 = arith.constant 0 : index
    %c0_7 = arith.constant 0 : index
    %15 = vector.load %arg3[%c0_6, %c0_7] : memref<16x128xf32, #tpu.memory_space<vmem>>, vector<16x128xf32>
    tpu.vector_store %arg3[%c0_6, %c0_7], %14 {strides = array<i32>} : memref<16x128xf32, #tpu.memory_space<vmem>>, vector<16x128xf32>,
    return
  }
}

module attributes {stable_mosaic.version = 11 : i64} {
  func.func @_fc_stack_kernel(%arg0: memref<2x400xf32, #tpu.memory_space<vmem>>, %arg1: memref<400x120xf32, #tpu.memory_space<vmem>>, %arg2: memref<1x120xf32, #tpu.memory_space<vmem>>, %arg3: memref<120x84xf32, #tpu.memory_space<vmem>>, %arg4: memref<1x84xf32, #tpu.memory_space<vmem>>, %arg5: memref<84x10xf32, #tpu.memory_space<vmem>>, %arg6: memref<1x10xf32, #tpu.memory_space<vmem>>, %arg7: memref<2x10xf32, #tpu.memory_space<vmem>>) attributes {dimension_semantics = [], scalar_prefetch = 0 : i64, scratch_operands = 0 : i64, tpu.core_type = #tpu.core_type<tc>} {
    %c0 = arith.constant 0 : index
    %c0_0 = arith.constant 0 : index
    %0 = vector.load %arg0[%c0, %c0_0] : memref<2x400xf32, #tpu.memory_space<vmem>>, vector<2x400xf32>
    %c0_1 = arith.constant 0 : index
    %c0_2 = arith.constant 0 : index
    %1 = vector.load %arg1[%c0_1, %c0_2] : memref<400x120xf32, #tpu.memory_space<vmem>>, vector<400x120xf32>
    %cst = arith.constant dense<0.000000e+00> : vector<2x120xf32>
    %2 = tpu.matmul %0, %1, %cst {dimension_numbers = #tpu.dot_dimension_numbers<[1], [0], [0], [1], [0, 0, 1, 1], [], []>} : vector<2x400xf32>, vector<400x120xf32>, vector<2x120xf32> -> vector<2x120xf32>
    %c0_3 = arith.constant 0 : index
    %c0_4 = arith.constant 0 : index
    %3 = vector.load %arg2[%c0_3, %c0_4] : memref<1x120xf32, #tpu.memory_space<vmem>>, vector<1x120xf32>
    %4 = vector.broadcast %3 : vector<1x120xf32> to vector<2x120xf32>
    %5 = arith.addf %2, %4 : vector<2x120xf32>
    %cst_5 = arith.constant 0.000000e+00 : f32
    %6 = vector.broadcast %cst_5 : f32 to vector<2x120xf32>
    %7 = arith.maximumf %5, %6 : vector<2x120xf32>
    %c0_6 = arith.constant 0 : index
    %c0_7 = arith.constant 0 : index
    %8 = vector.load %arg3[%c0_6, %c0_7] : memref<120x84xf32, #tpu.memory_space<vmem>>, vector<120x84xf32>
    %cst_8 = arith.constant dense<0.000000e+00> : vector<2x84xf32>
    %9 = tpu.matmul %7, %8, %cst_8 {dimension_numbers = #tpu.dot_dimension_numbers<[1], [0], [0], [1], [0, 0, 1, 1], [], []>} : vector<2x120xf32>, vector<120x84xf32>, vector<2x84xf32> -> vector<2x84xf32>
    %c0_9 = arith.constant 0 : index
    %c0_10 = arith.constant 0 : index
    %10 = vector.load %arg4[%c0_9, %c0_10] : memref<1x84xf32, #tpu.memory_space<vmem>>, vector<1x84xf32>
    %11 = vector.broadcast %10 : vector<1x84xf32> to vector<2x84xf32>
    %12 = arith.addf %9, %11 : vector<2x84xf32>
    %cst_11 = arith.constant 0.000000e+00 : f32
    %13 = vector.broadcast %cst_11 : f32 to vector<2x84xf32>
    %14 = arith.maximumf %12, %13 : vector<2x84xf32>
    %c0_12 = arith.constant 0 : index
    %c0_13 = arith.constant 0 : index
    %15 = vector.load %arg5[%c0_12, %c0_13] : memref<84x10xf32, #tpu.memory_space<vmem>>, vector<84x10xf32>
    %cst_14 = arith.constant dense<0.000000e+00> : vector<2x10xf32>
    %16 = tpu.matmul %14, %15, %cst_14 {dimension_numbers = #tpu.dot_dimension_numbers<[1], [0], [0], [1], [0, 0, 1, 1], [], []>} : vector<2x84xf32>, vector<84x10xf32>, vector<2x10xf32> -> vector<2x10xf32>
    %c0_15 = arith.constant 0 : index
    %c0_16 = arith.constant 0 : index
    %17 = vector.load %arg6[%c0_15, %c0_16] : memref<1x10xf32, #tpu.memory_space<vmem>>, vector<1x10xf32>
    %18 = vector.broadcast %17 : vector<1x10xf32> to vector<2x10xf32>
    %19 = arith.addf %16, %18 : vector<2x10xf32>
    %c0_17 = arith.constant 0 : index
    %c0_18 = arith.constant 0 : index
    %20 = vector.load %arg7[%c0_17, %c0_18] : memref<2x10xf32, #tpu.memory_space<vmem>>, vector<2x10xf32>
    tpu.vector_store %arg7[%c0_17, %c0_18], %19 {strides = array<i32>} : memref<2x10xf32, #tpu.memory_space<vmem>>, vector<2x10xf32>,
    return
  }
}

</mosaic_0001>

<bundles_post_ra>
// kernel: lenet5_forward.3
= control target key start
LH: loop header
LB: loop body
LE: loop exit
PB: predicated region body
PF: predicated region fallthrough
CT: control target
= control target key end

     0   :  { %v1042_v3 = vmov 0.0   ;;  %v1043_v8 = vmov 0   ;;  %vm185_vm0 = vcmask 1042432   ;;  %vm1044_vm1 = vmmov 1   ;;  %s1625_s0 = inlined_call_operand.vmem [shape: f32[75,2048], index: 0, kind: input, shape index: {}]   ;;  %s1626_s1 = inlined_call_operand.vmem [shape: f32[6,75], index: 1, kind: input, shape index: {}]   ;;  %s1627_s2 = inlined_call_operand.vmem [shape: f32[6,1], index: 2, kind: input, shape index: {}]   ;;  %s1628_s3 = inlined_call_operand.vmem [shape: f32[6,512], index: 3, kind: output, shape index: {}]  }
   0x1   :  { %v16_v0 = vld [vmem:[%s1625_s0 + $0x8] sm:$0xff]  ;;  %v18_v2 = vld [vmem:[%s1625_s0 + $0x18] sm:$0xff]  ;;  %298 = vmatprep.mubr.f32.mxu0 %v1042_v3  ;;  %369 = vmatprep.mubr.f32.mxu1 %v1042_v3  ;;  %v15_v6 = vld [vmem:[%s1625_s0] sm:$0xff]  ;;  %vm181_vm3 = vcmask 613376  }
   0x2   :  { %v32_v1 = vld [vmem:[%s1625_s0 + $0x88] sm:$0xff]  ;;  %v34_v5 = vld [vmem:[%s1625_s0 + $0x98] sm:$0xff]  ;;  %v31_v7 = vld [vmem:[%s1625_s0 + $0x80] sm:$0xff]  ;;  %1041 = vset.pattern.permute.xlu0 %v1043_v8 }
   0x3   :  { %v862_v4 = vpack.c.bf16 %v32_v1, %v16_v0  ;;  %v884_v9 = vpack.c.bf16 %v34_v5, %v18_v2  ;;  %v864_v10 = vpack.c.bf16 %v31_v7, %v15_v6  ;;  %v17_v11 = vld [vmem:[%s1625_s0 + $0x10] sm:$0xff]  ;;  %v48_v13 = vld [vmem:[%s1625_s0 + $0x108] sm:$0xff]  ;;  %v50_v16 = vld [vmem:[%s1625_s0 + $0x118] sm:$0xff] }
   0x4   :  { %v33_v12 = vld [vmem:[%s1625_s0 + $0x90] sm:$0xff]  ;;  %v64_v15 = vld [vmem:[%s1625_s0 + $0x188] sm:$0xff]  ;;  %v66_v17 = vld [vmem:[%s1625_s0 + $0x198] sm:$0xff] }
   0x5   :  { %863 = vmatprep.subr.bf16.mxu0 %v862_v4  ;;  %v886_v14 = vpack.c.bf16 %v33_v12, %v17_v11  ;;  %885 = vmatprep.subr.bf16.mxu1 %v884_v9  ;;  %v866_v18 = vpack.c.bf16 %v64_v15, %v48_v13  ;;  %v888_v19 = vpack.c.bf16 %v66_v17, %v50_v16  ;;  %v47_v20 = vld [vmem:[%s1625_s0 + $0x100] sm:$0xff]  ;;  %v49_v22 = vld [vmem:[%s1625_s0 + $0x110] sm:$0xff]  ;;  %v80_v25 = vld [vmem:[%s1625_s0 + $0x208] sm:$0xff] }
   0x6   :  { %865 = vmatpush1.bf16.msra.mxu0 %v864_v10  ;;  %v63_v21 = vld [vmem:[%s1625_s0 + $0x180] sm:$0xff]  ;;  %v65_v24 = vld [vmem:[%s1625_s0 + $0x190] sm:$0xff]  ;;  %v96_v26 = vld [vmem:[%s1625_s0 + $0x288] sm:$0xff] }
   0x7   :  { %887 = vmatpush1.bf16.msra.mxu1 %v886_v14  ;;  %v868_v23 = vpack.c.bf16 %v63_v21, %v47_v20  ;;  %867 = vmatprep.subr.bf16.mxu0 %v866_v18  ;;  %v890_v27 = vpack.c.bf16 %v65_v24, %v49_v22  ;;  %v870_v28 = vpack.c.bf16 %v96_v26, %v80_v25  ;;  %v82_v29 = vld [vmem:[%s1625_s0 + $0x218] sm:$0xff]  ;;  %v79_v31 = vld [vmem:[%s1625_s0 + $0x200] sm:$0xff]  ;;  %v81_v34 = vld [vmem:[%s1625_s0 + $0x210] sm:$0xff] }
   0x8   :  { %889 = vmatprep.subr.bf16.mxu1 %v888_v19  ;;  %v98_v30 = vld [vmem:[%s1625_s0 + $0x298] sm:$0xff]  ;;  %v95_v33 = vld [vmem:[%s1625_s0 + $0x280] sm:$0xff]  ;;  %v97_v35 = vld [vmem:[%s1625_s0 + $0x290] sm:$0xff] }
   0x9   :  { %v892_v32 = vpack.c.bf16 %v98_v30, %v82_v29  ;;  %v872_v36 = vpack.c.bf16 %v95_v33, %v79_v31  ;;  %v112_v37 = vld [vmem:[%s1625_s0 + $0x308] sm:$0xff]  ;;  %v114_v39 = vld [vmem:[%s1625_s0 + $0x318] sm:$0xff]  ;;  %v894_v40 = vpack.c.bf16 %v97_v35, %v81_v34  ;;  %v111_v43 = vld [vmem:[%s1625_s0 + $0x300] sm:$0xff] }
   0xa   :  { %869 = vmatpush1.bf16.msra.mxu0 %v868_v23  ;;  %v128_v38 = vld [vmem:[%s1625_s0 + $0x388] sm:$0xff]  ;;  %v130_v42 = vld [vmem:[%s1625_s0 + $0x398] sm:$0xff]  ;;  %v127_v44 = vld [vmem:[%s1625_s0 + $0x380] sm:$0xff] }
   0xb   :  { %891 = vmatpush1.bf16.msra.mxu1 %v890_v27  ;;  %871 = vmatprep.subr.bf16.mxu0 %v870_v28  ;;  %v874_v41 = vpack.c.bf16 %v128_v38, %v112_v37  ;;  %v896_v45 = vpack.c.bf16 %v130_v42, %v114_v39  ;;  %v113_v46 = vld [vmem:[%s1625_s0 + $0x310] sm:$0xff]  ;;  %v144_v48 = vld [vmem:[%s1625_s0 + $0x408] sm:$0xff]  ;;  %v146_v50 = vld [vmem:[%s1625_s0 + $0x418] sm:$0xff]  ;;  %v876_v51 = vpack.c.bf16 %v127_v44, %v111_v43 }
   0xc   :  { %893 = vmatprep.subr.bf16.mxu1 %v892_v32  ;;  %v129_v47 = vld [vmem:[%s1625_s0 + $0x390] sm:$0xff]  ;;  %v160_v49 = vld [vmem:[%s1625_s0 + $0x488] sm:$0x7]  ;;  %vm1172_vm2 = vmpackc.low %vm185_vm0, %vm1044_vm1 }
   0xd   :  { %v162_v53 = vld [vmem:[%s1625_s0 + $0x498] sm:$0x7]  ;;  %v898_v54 = vpack.c.bf16 %v129_v47, %v113_v46  ;;  %v878_v55 = vpack.c.bf16 %v160_v49, %v144_v48  ;;  %v143_v56 = vld [vmem:[%s1625_s0 + $0x400] sm:$0xff]  ;;  %v145_v58 = vld [vmem:[%s1625_s0 + $0x410] sm:$0xff] }
   0xe   :  { %873 = vmatpush1.bf16.msra.mxu0 %v872_v36  ;;  %v159_v57 = vld [vmem:[%s1625_s0 + $0x480] sm:$0x7]  ;;  %v900_v59 = vpack.c.bf16 %v162_v53, %v146_v50  ;;  %v161_v60 = vld [vmem:[%s1625_s0 + $0x490] sm:$0x7]  ;;  %v20_v61 = vld [vmem:[%s1625_s0 + $0x28] sm:$0xff] }
   0xf   :  { %895 = vmatpush1.bf16.msra.mxu1 %v894_v40  ;;  %875 = vmatprep.subr.bf16.mxu0 %v874_v41  ;;  %v36_v62 = vld [vmem:[%s1625_s0 + $0xa8] sm:$0xff]  ;;  %v22_v63 = vld [vmem:[%s1625_s0 + $0x38] sm:$0xff]  ;;  %v881_v1 = vpack.c.bf16 %v159_v57, %v143_v56  ;;  %v903_v2 = vpack.c.bf16 %v161_v60, %v145_v58  ;;  %v19_v5 = vld [vmem:[%s1625_s0 + $0x20] sm:$0xff] }
  0x10   :  { %897 = vmatprep.subr.bf16.mxu1 %v896_v45  ;;  %v38_v0 = vld [vmem:[%s1625_s0 + $0xb8] sm:$0xff]  ;;  %v906_v4 = vpack.c.bf16 %v36_v62, %v20_v61  ;;  %v35_v6 = vld [vmem:[%s1625_s0 + $0xa0] sm:$0xff]  ;;  %v21_v7 = vld [vmem:[%s1625_s0 + $0x30] sm:$0xff] }
  0x11   :  { %v928_v8 = vpack.c.bf16 %v38_v0, %v22_v63  ;;  %v37_v9 = vld [vmem:[%s1625_s0 + $0xb0] sm:$0xff]  ;;  %v52_v10 = vld [vmem:[%s1625_s0 + $0x128] sm:$0xff]  ;;  %v54_v12 = vld [vmem:[%s1625_s0 + $0x138] sm:$0xff]  ;;  %v908_v15 = vpack.c.bf16 %v35_v6, %v19_v5 }
  0x12   :  { %877 = vmatpush1.bf16.msra.mxu0 %v876_v51  ;;  %v68_v11 = vld [vmem:[%s1625_s0 + $0x1a8] sm:$0xff]  ;;  %v70_v13 = vld [vmem:[%s1625_s0 + $0x1b8] sm:$0xff]  ;;  %v1236_v14 = vld [vmem:[%s1626_s1] sm:$0x3f]  ;;  %v930_v16 = vpack.c.bf16 %v37_v9, %v21_v7 }
  0x13   :  { %899 = vmatpush1.bf16.msra.mxu1 %v898_v54  ;;  %880 = vmatprep.subr.msk.bf16.mxu0 %vm1172_vm2, %v878_v55  ;;  %v910_v17 = vpack.c.bf16 %v68_v11, %v52_v10  ;;  %v51_v18 = vld [vmem:[%s1625_s0 + $0x120] sm:$0xff]  ;;  %v53_v20 = vld [vmem:[%s1625_s0 + $0x130] sm:$0xff]  ;;  %v932_v21 = vpack.c.bf16 %v70_v13, %v54_v12  ;;  %v84_v23 = vld [vmem:[%s1625_s0 + $0x228] sm:$0xff] }
  0x14   :  { %902 = vmatprep.subr.msk.bf16.mxu1 %vm1172_vm2, %v900_v59  ;;  %v67_v19 = vld [vmem:[%s1625_s0 + $0x1a0] sm:$0xff]  ;;  %v69_v22 = vld [vmem:[%s1625_s0 + $0x1b0] sm:$0xff]  ;;  %v100_v24 = vld [vmem:[%s1625_s0 + $0x2a8] sm:$0xff] }
  0x15   :  { %v86_v25 = vld [vmem:[%s1625_s0 + $0x238] sm:$0xff]  ;;  %v912_v27 = vpack.c.bf16 %v67_v19, %v51_v18  ;;  %v934_v28 = vpack.c.bf16 %v69_v22, %v53_v20  ;;  %v914_v29 = vpack.c.bf16 %v100_v24, %v84_v23  ;;  %v83_v30 = vld [vmem:[%s1625_s0 + $0x220] sm:$0xff]  ;;  %v85_v32 = vld [vmem:[%s1625_s0 + $0x230] sm:$0xff] }
  0x16   :  { %883 = vmatpush1.bf16.msk.msra.mxu0 %vm1172_vm2, %v881_v1  ;;  %v102_v26 = vld [vmem:[%s1625_s0 + $0x2b8] sm:$0xff]  ;;  %v99_v31 = vld [vmem:[%s1625_s0 + $0x2a0] sm:$0xff]  ;;  %v101_v34 = vld [vmem:[%s1625_s0 + $0x2b0] sm:$0xff] }
  0x17   :  { %905 = vmatpush1.bf16.msk.msra.mxu1 %vm1172_vm2, %v903_v2  ;;  %907 = vmatprep.subr.bf16.mxu0 %v906_v4  ;;  %v936_v33 = vpack.c.bf16 %v102_v26, %v86_v25  ;;  %v116_v35 = vld [vmem:[%s1625_s0 + $0x328] sm:$0xff]  ;;  %v118_v37 = vld [vmem:[%s1625_s0 + $0x338] sm:$0xff]  ;;  %v916_v39 = vpack.c.bf16 %v99_v31, %v83_v30  ;;  %v938_v40 = vpack.c.bf16 %v101_v34, %v85_v32  ;;  %v115_v42 = vld [vmem:[%s1625_s0 + $0x320] sm:$0xff] }
  0x18   :  { %929 = vmatprep.subr.bf16.mxu1 %v928_v8  ;;  %v132_v36 = vld [vmem:[%s1625_s0 + $0x3a8] sm:$0xff]  ;;  %v134_v38 = vld [vmem:[%s1625_s0 + $0x3b8] sm:$0xff]  ;;  %v131_v43 = vld [vmem:[%s1625_s0 + $0x3a0] sm:$0xff] }
  0x19   :  { %840 = vmatmul.mubr.msk.f32.vlgmr.msra.gmra.mrb[0].mxu0 %vm181_vm3, %v1236_v14  ;;  %v918_v41 = vpack.c.bf16 %v132_v36, %v116_v35  ;;  %v117_v44 = vld [vmem:[%s1625_s0 + $0x330] sm:$0xff]  ;;  %v940_v45 = vpack.c.bf16 %v134_v38, %v118_v37  ;;  %v148_v47 = vld [vmem:[%s1625_s0 + $0x428] sm:$0xff]  ;;  %v150_v49 = vld [vmem:[%s1625_s0 + $0x438] sm:$0xff]  ;;  %v920_v51 = vpack.c.bf16 %v131_v43, %v115_v42 }
  0x1a   :  { %843 = vmatmul.mubr.msk.f32.vlgmr.msra.gmra.mrb[0].mxu1 %vm181_vm3, %v1236_v14  ;;  %909 = vmatpush1.bf16.msra.mxu0 %v908_v15  ;;  %v133_v46 = vld [vmem:[%s1625_s0 + $0x3b0] sm:$0xff]  ;;  %v164_v48 = vld [vmem:[%s1625_s0 + $0x4a8] sm:$0x7]  ;;  %v166_v50 = vld [vmem:[%s1625_s0 + $0x4b8] sm:$0x7] }
  0x1b   :  { %931 = vmatpush1.bf16.msra.mxu1 %v930_v16  ;;  %911 = vmatprep.subr.bf16.mxu0 %v910_v17  ;;  %v942_v53 = vpack.c.bf16 %v133_v46, %v117_v44  ;;  %v922_v54 = vpack.c.bf16 %v164_v48, %v148_v47  ;;  %v147_v55 = vld [vmem:[%s1625_s0 + $0x420] sm:$0xff]  ;;  %v149_v57 = vld [vmem:[%s1625_s0 + $0x430] sm:$0xff]  ;;  %v944_v58 = vpack.c.bf16 %v166_v50, %v150_v49  ;;  %v24_v60 = vld [vmem:[%s1625_s0 + $0x48] sm:$0xff] }
  0x1c   :  { %933 = vmatprep.subr.bf16.mxu1 %v932_v21  ;;  %440 = vmatprep.mubr.f32.mxu0 %v1042_v3  ;;  %v163_v56 = vld [vmem:[%s1625_s0 + $0x4a0] sm:$0x7]  ;;  %v165_v59 = vld [vmem:[%s1625_s0 + $0x4b0] sm:$0x7]  ;;  %v40_v61 = vld [vmem:[%s1625_s0 + $0xc8] sm:$0xff] }
  0x1d   :  { %511 = vmatprep.mubr.f32.mxu1 %v1042_v3  ;;  %v26_v62 = vld [vmem:[%s1625_s0 + $0x58] sm:$0xff]  ;;  %v925_v0 = vpack.c.bf16 %v163_v56, %v147_v55  ;;  %v947_v1 = vpack.c.bf16 %v165_v59, %v149_v57  ;;  %v950_v2 = vpack.c.bf16 %v40_v61, %v24_v60  ;;  %v23_v4 = vld [vmem:[%s1625_s0 + $0x40] sm:$0xff]  ;;  %v25_v6 = vld [vmem:[%s1625_s0 + $0x50] sm:$0xff] }
  0x1e   :  { %913 = vmatpush1.bf16.msra.mxu0 %v912_v27  ;;  %v42_v63 = vld [vmem:[%s1625_s0 + $0xd8] sm:$0xff]  ;;  %v39_v5 = vld [vmem:[%s1625_s0 + $0xc0] sm:$0xff]  ;;  %v41_v8 = vld [vmem:[%s1625_s0 + $0xd0] sm:$0xff] }
  0x1f   :  { %935 = vmatpush1.bf16.msra.mxu1 %v934_v28  ;;  %915 = vmatprep.subr.bf16.mxu0 %v914_v29  ;;  %v972_v7 = vpack.c.bf16 %v42_v63, %v26_v62  ;;  %v56_v9 = vld [vmem:[%s1625_s0 + $0x148] sm:$0xff]  ;;  %v58_v11 = vld [vmem:[%s1625_s0 + $0x158] sm:$0xff]  ;;  %v952_v13 = vpack.c.bf16 %v39_v5, %v23_v4  ;;  %v974_v15 = vpack.c.bf16 %v41_v8, %v25_v6  ;;  %v55_v17 = vld [vmem:[%s1625_s0 + $0x140] sm:$0xff] }
  0x20   :  { %937 = vmatprep.subr.bf16.mxu1 %v936_v33  ;;  %v72_v10 = vld [vmem:[%s1625_s0 + $0x1c8] sm:$0xff]  ;;  %v74_v12 = vld [vmem:[%s1625_s0 + $0x1d8] sm:$0xff]  ;;  %v71_v18 = vld [vmem:[%s1625_s0 + $0x1c0] sm:$0xff] }
  0x21   :  { %v954_v16 = vpack.c.bf16 %v72_v10, %v56_v9  ;;  %v57_v19 = vld [vmem:[%s1625_s0 + $0x150] sm:$0xff]  ;;  %v976_v20 = vpack.c.bf16 %v74_v12, %v58_v11  ;;  %v88_v22 = vld [vmem:[%s1625_s0 + $0x248] sm:$0xff]  ;;  %v90_v24 = vld [vmem:[%s1625_s0 + $0x258] sm:$0xff]  ;;  %v956_v26 = vpack.c.bf16 %v71_v18, %v55_v17 }
  0x22   :  { %917 = vmatpush1.bf16.msra.mxu0 %v916_v39  ;;  %v73_v21 = vld [vmem:[%s1625_s0 + $0x1d0] sm:$0xff]  ;;  %v104_v23 = vld [vmem:[%s1625_s0 + $0x2c8] sm:$0xff]  ;;  %v106_v25 = vld [vmem:[%s1625_s0 + $0x2d8] sm:$0xff] }
  0x23   :  { %939 = vmatpush1.bf16.msra.mxu1 %v938_v40  ;;  %919 = vmatprep.subr.bf16.mxu0 %v918_v41  ;;  %v978_v27 = vpack.c.bf16 %v73_v21, %v57_v19  ;;  %v958_v28 = vpack.c.bf16 %v104_v23, %v88_v22  ;;  %v87_v29 = vld [vmem:[%s1625_s0 + $0x240] sm:$0xff]  ;;  %v89_v31 = vld [vmem:[%s1625_s0 + $0x250] sm:$0xff]  ;;  %v980_v32 = vpack.c.bf16 %v106_v25, %v90_v24  ;;  %v120_v34 = vld [vmem:[%s1625_s0 + $0x348] sm:$0xff] }
  0x24   :  { %941 = vmatprep.subr.bf16.mxu1 %v940_v45  ;;  %v103_v30 = vld [vmem:[%s1625_s0 + $0x2c0] sm:$0xff]  ;;  %v105_v33 = vld [vmem:[%s1625_s0 + $0x2d0] sm:$0xff]  ;;  %v136_v35 = vld [vmem:[%s1625_s0 + $0x3c8] sm:$0xff] }
  0x25   :  { %v122_v36 = vld [vmem:[%s1625_s0 + $0x358] sm:$0xff]  ;;  %v960_v38 = vpack.c.bf16 %v103_v30, %v87_v29  ;;  %v982_v39 = vpack.c.bf16 %v105_v33, %v89_v31  ;;  %v962_v40 = vpack.c.bf16 %v136_v35, %v120_v34  ;;  %v119_v41 = vld [vmem:[%s1625_s0 + $0x340] sm:$0xff]  ;;  %v121_v43 = vld [vmem:[%s1625_s0 + $0x350] sm:$0xff] }
  0x26   :  { %921 = vmatpush1.bf16.msra.mxu0 %v920_v51  ;;  %v138_v37 = vld [vmem:[%s1625_s0 + $0x3d8] sm:$0xff]  ;;  %v135_v42 = vld [vmem:[%s1625_s0 + $0x3c0] sm:$0xff]  ;;  %v137_v45 = vld [vmem:[%s1625_s0 + $0x3d0] sm:$0xff] }
  0x27   :  { %943 = vmatpush1.bf16.msra.mxu1 %v942_v53  ;;  %924 = vmatprep.subr.msk.bf16.mxu0 %vm1172_vm2, %v922_v54  ;;  %v984_v44 = vpack.c.bf16 %v138_v37, %v122_v36  ;;  %v152_v46 = vld [vmem:[%s1625_s0 + $0x448] sm:$0xff]  ;;  %v154_v48 = vld [vmem:[%s1625_s0 + $0x458] sm:$0xff]  ;;  %v964_v50 = vpack.c.bf16 %v135_v42, %v119_v41  ;;  %v151_v51 = vld [vmem:[%s1625_s0 + $0x440] sm:$0xff]  ;;  %v986_v53 = vpack.c.bf16 %v137_v45, %v121_v43 }
  0x28   :  { %946 = vmatprep.subr.msk.bf16.mxu1 %vm1172_vm2, %v944_v58  ;;  %v168_v47 = vld [vmem:[%s1625_s0 + $0x4c8] sm:$0x7]  ;;  %v170_v49 = vld [vmem:[%s1625_s0 + $0x4d8] sm:$0x7]  ;;  %v167_v55 = vld [vmem:[%s1625_s0 + $0x4c0] sm:$0x7] }
  0x29   :  { %v966_v54 = vpack.c.bf16 %v168_v47, %v152_v46  ;;  %v153_v56 = vld [vmem:[%s1625_s0 + $0x450] sm:$0xff]  ;;  %v988_v58 = vpack.c.bf16 %v170_v49, %v154_v48  ;;  %v28_v59 = vld [vmem:[%s1625_s0 + $0x68] sm:$0xff]  ;;  %v175_v61 = vld [vmem:[%s1627_s2] sm:$0x3f] }
  0x2a   :  { %927 = vmatpush1.bf16.msk.msra.mxu0 %vm1172_vm2, %v925_v0  ;;  %v169_v57 = vld [vmem:[%s1625_s0 + $0x4d0] sm:$0x7]  ;;  %v44_v60 = vld [vmem:[%s1625_s0 + $0xe8] sm:$0xff]  ;;  %v30_v62 = vld [vmem:[%s1625_s0 + $0x78] sm:$0xff]  ;;  %178 = vperm.xlu0 %1041, %v175_v61   ;;  %v969_v0 = vpack.c.bf16 %v167_v55, %v151_v51 }
  0x2b   :  { %949 = vmatpush1.bf16.msk.msra.mxu1 %vm1172_vm2, %v947_v1  ;;  %951 = vmatprep.subr.bf16.mxu0 %v950_v2  ;;  %v46_v63 = vld [vmem:[%s1625_s0 + $0xf8] sm:$0xff]  ;;  %v991_v1 = vpack.c.bf16 %v169_v57, %v153_v56  ;;  %v994_v2 = vpack.c.bf16 %v44_v60, %v28_v59  ;;  %v27_v4 = vld [vmem:[%s1625_s0 + $0x60] sm:$0xff]  ;;  %v29_v6 = vld [vmem:[%s1625_s0 + $0x70] sm:$0xff] }
  0x2c   :  { %973 = vmatprep.subr.bf16.mxu1 %v972_v7  ;;  %v43_v5 = vld [vmem:[%s1625_s0 + $0xe0] sm:$0xff]  ;;  %v1016_v7 = vpack.c.bf16 %v46_v63, %v30_v62  ;;  %v45_v8 = vld [vmem:[%s1625_s0 + $0xf0] sm:$0xff]  ;;  %v60_v9 = vld [vmem:[%s1625_s0 + $0x168] sm:$0xff] }
  0x2d   :  { %846 = vmatmul.mubr.msk.f32.vlgmr.msra.gmra.mrb[2].mxu0 %vm181_vm3, %v1236_v14  ;;  %v76_v10 = vld [vmem:[%s1625_s0 + $0x1e8] sm:$0xff]  ;;  %v62_v11 = vld [vmem:[%s1625_s0 + $0x178] sm:$0xff]  ;;  %v59_v17 = vld [vmem:[%s1625_s0 + $0x160] sm:$0xff] }
  0x2e   :  { %849 = vmatmul.mubr.msk.f32.vlgmr.msra.gmra.mrb[2].mxu1 %vm181_vm3, %v1236_v14  ;;  %953 = vmatpush1.bf16.msra.mxu0 %v952_v13  ;;  %v78_v12 = vld [vmem:[%s1625_s0 + $0x1f8] sm:$0xff]  ;;  %v996_v13 = vpack.c.bf16 %v43_v5, %v27_v4  ;;  %v75_v18 = vld [vmem:[%s1625_s0 + $0x1e0] sm:$0xff]  ;;  %v61_v19 = vld [vmem:[%s1625_s0 + $0x170] sm:$0xff] }
  0x2f   :  { %975 = vmatpush1.bf16.msra.mxu1 %v974_v15  ;;  %955 = vmatprep.subr.bf16.mxu0 %v954_v16  ;;  %v1018_v15 = vpack.c.bf16 %v45_v8, %v29_v6  ;;  %v998_v16 = vpack.c.bf16 %v76_v10, %v60_v9  ;;  %v77_v21 = vld [vmem:[%s1625_s0 + $0x1f0] sm:$0xff]  ;;  %v92_v22 = vld [vmem:[%s1625_s0 + $0x268] sm:$0xff]  ;;  %v94_v24 = vld [vmem:[%s1625_s0 + $0x278] sm:$0xff] }
  0x30   :  { %977 = vmatprep.subr.bf16.mxu1 %v976_v20  ;;  %582 = vmatprep.mubr.f32.mxu0 %v1042_v3  ;;  %v1020_v20 = vpack.c.bf16 %v78_v12, %v62_v11  ;;  %v108_v23 = vld [vmem:[%s1625_s0 + $0x2e8] sm:$0xff]  ;;  %v110_v25 = vld [vmem:[%s1625_s0 + $0x2f8] sm:$0xff]  ;;  %v91_v29 = vld [vmem:[%s1625_s0 + $0x260] sm:$0xff] }
  0x31   :  { %653 = vmatprep.mubr.f32.mxu1 %v1042_v3  ;;  %v107_v30 = vld [vmem:[%s1625_s0 + $0x2e0] sm:$0xff]  ;;  %v93_v31 = vld [vmem:[%s1625_s0 + $0x270] sm:$0xff]  ;;  %v124_v34 = vld [vmem:[%s1625_s0 + $0x368] sm:$0xff] }
  0x32   :  { %957 = vmatpush1.bf16.msra.mxu0 %v956_v26  ;;  %v1000_v26 = vpack.c.bf16 %v75_v18, %v59_v17  ;;  %v109_v33 = vld [vmem:[%s1625_s0 + $0x2f0] sm:$0xff]  ;;  %v140_v35 = vld [vmem:[%s1625_s0 + $0x3e8] sm:$0xff]  ;;  %v126_v36 = vld [vmem:[%s1625_s0 + $0x378] sm:$0xff] }
  0x33   :  { %979 = vmatpush1.bf16.msra.mxu1 %v978_v27  ;;  %959 = vmatprep.subr.bf16.mxu0 %v958_v28  ;;  %v1022_v27 = vpack.c.bf16 %v77_v21, %v61_v19  ;;  %v1002_v28 = vpack.c.bf16 %v108_v23, %v92_v22  ;;  %v142_v37 = vld [vmem:[%s1625_s0 + $0x3f8] sm:$0xff]  ;;  %v123_v41 = vld [vmem:[%s1625_s0 + $0x360] sm:$0xff]  ;;  %v125_v43 = vld [vmem:[%s1625_s0 + $0x370] sm:$0xff] }
  0x34   :  { %981 = vmatprep.subr.bf16.mxu1 %v980_v32  ;;  %v1024_v32 = vpack.c.bf16 %v110_v25, %v94_v24  ;;  %v139_v42 = vld [vmem:[%s1625_s0 + $0x3e0] sm:$0xff]  ;;  %v156_v45 = vld [vmem:[%s1625_s0 + $0x468] sm:$0xff]  ;;  %v158_v47 = vld [vmem:[%s1625_s0 + $0x478] sm:$0xff] }
  0x35   :  { %v172_v46 = vld [vmem:[%s1625_s0 + $0x4e8] sm:$0x7]  ;;  %v174_v48 = vld [vmem:[%s1625_s0 + $0x4f8] sm:$0x7]  ;;  %v1008_v49 = vpack.c.bf16 %v139_v42, %v123_v41  ;;  %v157_v56 = vld [vmem:[%s1625_s0 + $0x470] sm:$0xff] }
  0x36   :  { %961 = vmatpush1.bf16.msra.mxu0 %v960_v38  ;;  %v1004_v38 = vpack.c.bf16 %v107_v30, %v91_v29  ;;  %v1010_v51 = vpack.c.bf16 %v172_v46, %v156_v45  ;;  %v1032_v55 = vpack.c.bf16 %v174_v48, %v158_v47  ;;  %v173_v57 = vld [vmem:[%s1625_s0 + $0x4f0] sm:$0x7] }
  0x37   :  { %983 = vmatpush1.bf16.msra.mxu1 %v982_v39  ;;  %963 = vmatprep.subr.bf16.mxu0 %v962_v40  ;;  %v1026_v39 = vpack.c.bf16 %v109_v33, %v93_v31  ;;  %v1006_v40 = vpack.c.bf16 %v140_v35, %v124_v34  ;;  %v1035_v59 = vpack.c.bf16 %v173_v57, %v157_v56 }
  0x38   :  { %985 = vmatprep.subr.bf16.mxu1 %v984_v44  ;;  %v141_v44 = vld [vmem:[%s1625_s0 + $0x3f0] sm:$0xff] }
  0x3a   :  { %965 = vmatpush1.bf16.msra.mxu0 %v964_v50  ;;  %v1030_v50 = vpack.c.bf16 %v141_v44, %v125_v43 }
  0x3b   :  { %987 = vmatpush1.bf16.msra.mxu1 %v986_v53  ;;  %968 = vmatprep.subr.msk.bf16.mxu0 %vm1172_vm2, %v966_v54  ;;  %v155_v53 = vld [vmem:[%s1625_s0 + $0x460] sm:$0xff] }
  0x3c   :  { %990 = vmatprep.subr.msk.bf16.mxu1 %vm1172_vm2, %v988_v58  ;;  %v171_v54 = vld [vmem:[%s1625_s0 + $0x4e0] sm:$0x7] }
  0x3d   :  { %v1013_v58 = vpack.c.bf16 %v171_v54, %v155_v53 }
  0x3e   :  { %971 = vmatpush1.bf16.msk.msra.mxu0 %vm1172_vm2, %v969_v0 }
  0x3f   :  { %993 = vmatpush1.bf16.msk.msra.mxu1 %vm1172_vm2, %v991_v1  ;;  %995 = vmatprep.subr.bf16.mxu0 %v994_v2 }
  0x40   :  { %1017 = vmatprep.subr.bf16.mxu1 %v1016_v7 }
  0x41   :  { %852 = vmatmul.mubr.msk.f32.vlgmr.msra.gmra.mrb[4].mxu0 %vm181_vm3, %v1236_v14 }
  0x42   :  { %855 = vmatmul.mubr.msk.f32.vlgmr.msra.gmra.mrb[4].mxu1 %vm181_vm3, %v1236_v14  ;;  %997 = vmatpush1.bf16.msra.mxu0 %v996_v13 }
  0x43   :  { %1019 = vmatpush1.bf16.msra.mxu1 %v1018_v15  ;;  %999 = vmatprep.subr.bf16.mxu0 %v998_v16 }
  0x44   :  { %1021 = vmatprep.subr.bf16.mxu1 %v1020_v20  ;;  %724 = vmatprep.mubr.f32.mxu0 %v1042_v3 }
  0x45   :  { %795 = vmatprep.mubr.f32.mxu1 %v1042_v3  ;;  %v1028_v3 = vpack.c.bf16 %v142_v37, %v126_v36 }
  0x46   :  { %1001 = vmatpush1.bf16.msra.mxu0 %v1000_v26 }
  0x47   :  { %1023 = vmatpush1.bf16.msra.mxu1 %v1022_v27  ;;  %1003 = vmatprep.subr.bf16.mxu0 %v1002_v28 }
  0x48   :  { %1025 = vmatprep.subr.bf16.mxu1 %v1024_v32 }
  0x4a   :  { %1005 = vmatpush1.bf16.msra.mxu0 %v1004_v38 }
  0x4b   :  { %1027 = vmatpush1.bf16.msra.mxu1 %v1026_v39  ;;  %1007 = vmatprep.subr.bf16.mxu0 %v1006_v40 }
  0x4c   :  { %1029 = vmatprep.subr.bf16.mxu1 %v1028_v3 }
  0x4e   :  { %1009 = vmatpush1.bf16.msra.mxu0 %v1008_v49 }
  0x4f   :  { %1031 = vmatpush1.bf16.msra.mxu1 %v1030_v50  ;;  %1012 = vmatprep.subr.msk.bf16.mxu0 %vm1172_vm2, %v1010_v51 }
  0x50   :  { %1034 = vmatprep.subr.msk.bf16.mxu1 %vm1172_vm2, %v1032_v55 }
  0x52   :  { %1015 = vmatpush1.bf16.msk.msra.mxu0 %vm1172_vm2, %v1013_v58 }
  0x53   :  { %1037 = vmatpush1.bf16.msk.msra.mxu1 %vm1172_vm2, %v1035_v59 }
  0x55   :  { %858 = vmatmul.mubr.msk.f32.vlgmr.msra.gmra.mrb[6].mxu0 %vm181_vm3, %v1236_v14 }
  0x56   :  { %861 = vmatmul.mubr.msk.f32.vlgmr.msra.gmra.mrb[6].mxu1 %vm181_vm3, %v1236_v14 }
  0xa9   :  { %v179_v0 = vpop.permute.xlu0 %178 }
  0xec   :  { %v300_v60 = vpop.f32.mrb[0].mxu0 }
  0xed   :  { %v371_v61 = vpop.f32.mrb[0].mxu1  ;;  %v302_v62 = vpop.f32.mrb[1].mxu0  ;;  %v301_v1 = vadd.f32 %v300_v60, %v179_v0 }
  0xee   :  { %v373_v63 = vpop.f32.mrb[1].mxu1  ;;  %v303_v2 = vadd.f32 %v302_v62, %v179_v0  ;;  %v372_v5 = vadd.f32 %v371_v61, %v179_v0 }
  0xef   :  { %v374_v6 = vadd.f32 %v373_v63, %v179_v0  ;;  %v802_v12 = vmax.f32 %v301_v1, 0.0 }
  0xf0   :  { %v803_v14 = vmax.f32 %v303_v2, 0.0  ;;  %v804_v16 = vmax.f32 %v372_v5, 0.0 }
  0xf1   :  { %v805_v19 = vmax.f32 %v374_v6, 0.0 }
 0x100   :  { %v442_v4 = vpop.f32.mrb[2].mxu0 }
 0x101   :  { %v443_v7 = vadd.f32 %v442_v4, %v179_v0  ;;  %v513_v8 = vpop.f32.mrb[2].mxu1  ;;  %v444_v52 = vpop.f32.mrb[3].mxu0 }
 0x102   :  { %v514_v9 = vadd.f32 %v513_v8, %v179_v0  ;;  %v445_v10 = vadd.f32 %v444_v52, %v179_v0  ;;  %v515_v11 = vpop.f32.mrb[3].mxu1 }
 0x103   :  { %v806_v13 = vmax.f32 %v443_v7, 0.0  ;;  %v516_v15 = vadd.f32 %v515_v11, %v179_v0 }
 0x104   :  { %v808_v17 = vmax.f32 %v514_v9, 0.0  ;;  %v807_v18 = vmax.f32 %v445_v10, 0.0 }
 0x105   :  { %v818_v20 = vmax.f32 %v802_v12, %v806_v13  ;;  %v809_v21 = vmax.f32 %v516_v15, 0.0 }
 0x106   :  { %v820_v22 = vmax.f32 %v804_v16, %v808_v17  ;;  %v819_v23 = vmax.f32 %v803_v14, %v807_v18 }
 0x107   :  { %v821_v24 = vmax.f32 %v805_v19, %v809_v21 }
 0x114   :  { %v584_v25 = vpop.f32.mrb[4].mxu0 }
 0x115   :  { %v655_v26 = vpop.f32.mrb[4].mxu1  ;;  %v586_v27 = vpop.f32.mrb[5].mxu0  ;;  %v585_v29 = vadd.f32 %v584_v25, %v179_v0 }
 0x116   :  { %v657_v28 = vpop.f32.mrb[5].mxu1  ;;  %v656_v30 = vadd.f32 %v655_v26, %v179_v0  ;;  %v587_v31 = vadd.f32 %v586_v27, %v179_v0 }
 0x117   :  { %v658_v33 = vadd.f32 %v657_v28, %v179_v0  ;;  %v810_v40 = vmax.f32 %v585_v29, 0.0 }
 0x118   :  { %v812_v43 = vmax.f32 %v656_v30, 0.0  ;;  %v811_v3 = vmax.f32 %v587_v31, 0.0 }
 0x119   :  { %v813_v46 = vmax.f32 %v658_v33, 0.0 }
 0x128   :  { %v726_v32 = vpop.f32.mrb[6].mxu0 }
 0x129   :  { %v727_v34 = vadd.f32 %v726_v32, %v179_v0  ;;  %v797_v35 = vpop.f32.mrb[6].mxu1  ;;  %v728_v36 = vpop.f32.mrb[7].mxu0 }
 0x12a   :  { %v798_v37 = vadd.f32 %v797_v35, %v179_v0  ;;  %v729_v38 = vadd.f32 %v728_v36, %v179_v0  ;;  %v799_v39 = vpop.f32.mrb[7].mxu1 }
 0x12b   :  { %v814_v41 = vmax.f32 %v727_v34, 0.0  ;;  %v800_v42 = vadd.f32 %v799_v39, %v179_v0 }
 0x12c   :  { %v816_v44 = vmax.f32 %v798_v37, 0.0  ;;  %v815_v45 = vmax.f32 %v729_v38, 0.0 }
 0x12d   :  { %v822_v47 = vmax.f32 %v810_v40, %v814_v41  ;;  %v817_v48 = vmax.f32 %v800_v42, 0.0 }
 0x12e   :  { %v824_v49 = vmax.f32 %v812_v43, %v816_v44  ;;  %v823_v50 = vmax.f32 %v811_v3, %v815_v45 }
 0x12f   :  { %v826_v51 = vmax.f32 %v818_v20, %v822_v47  ;;  %v825_v53 = vmax.f32 %v813_v46, %v817_v48 }
 0x130   :  { %v828_v54 = vmax.f32 %v820_v22, %v824_v49  ;;  %v827_v55 = vmax.f32 %v819_v23, %v823_v50 }
 0x131   :  { %830 = vst [vmem:[%s1628_s3] sm:$0x3f] %v826_v51  ;;  %v829_v56 = vmax.f32 %v821_v24, %v825_v53 }
 0x132   :  { %832 = vst [vmem:[%s1628_s3 + $0x10] sm:$0x3f] %v828_v54  ;;  %831 = vst [vmem:[%s1628_s3 + $0x8] sm:$0x3f] %v827_v55 }
 0x133   :  { %833 = vst [vmem:[%s1628_s3 + $0x18] sm:$0x3f] %v829_v56 }

// kernel: lenet5_forward.4
= control target key start
LH: loop header
LB: loop body
LE: loop exit
PB: predicated region body
PF: predicated region fallthrough
CT: control target
= control target key end

     0   :  { %v382_v3 = vmov 0   ;;  %vm106_vm0 = vcmask 179200   ;;  %vm113_vm1 = vcmask 1045504   ;;  %s659_s0 = inlined_call_operand.vmem [shape: f32[150,512], index: 0, kind: input, shape index: {}]   ;;  %s660_s1 = inlined_call_operand.vmem [shape: f32[16,150], index: 1, kind: input, shape index: {}]   ;;  %s661_s2 = inlined_call_operand.vmem [shape: f32[16,1], index: 2, kind: input, shape index: {}]   ;;  %s662_s3 = inlined_call_operand.vmem [shape: f32[16,128], index: 3, kind: output, shape index: {}]  }
   0x1   :  { %v19_v0 = vld [vmem:[%s659_s0 + $0x8] sm:$0xff]  ;;  %v21_v2 = vld [vmem:[%s659_s0 + $0x18] sm:$0xff]  ;;  %381 = vset.pattern.permute.xlu0 %v382_v3  ;;  %v18_v6 = vld [vmem:[%s659_s0] sm:$0xff] }
   0x2   :  { %v23_v1 = vld [vmem:[%s659_s0 + $0x28] sm:$0xff]  ;;  %v25_v5 = vld [vmem:[%s659_s0 + $0x38] sm:$0xff]  ;;  %v22_v7 = vld [vmem:[%s659_s0 + $0x20] sm:$0xff] }
   0x3   :  { %v308_v4 = vpack.c.bf16 %v23_v1, %v19_v0  ;;  %v344_v8 = vpack.c.bf16 %v25_v5, %v21_v2  ;;  %v310_v9 = vpack.c.bf16 %v22_v7, %v18_v6  ;;  %v20_v10 = vld [vmem:[%s659_s0 + $0x10] sm:$0xff]  ;;  %v27_v12 = vld [vmem:[%s659_s0 + $0x48] sm:$0xff]  ;;  %v29_v15 = vld [vmem:[%s659_s0 + $0x58] sm:$0xff] }
   0x4   :  { %v24_v11 = vld [vmem:[%s659_s0 + $0x30] sm:$0xff]  ;;  %v31_v14 = vld [vmem:[%s659_s0 + $0x68] sm:$0xff]  ;;  %v33_v16 = vld [vmem:[%s659_s0 + $0x78] sm:$0xff] }
   0x5   :  { %309 = vmatprep.subr.bf16.mxu0 %v308_v4  ;;  %v346_v13 = vpack.c.bf16 %v24_v11, %v20_v10  ;;  %345 = vmatprep.subr.bf16.mxu1 %v344_v8  ;;  %v312_v17 = vpack.c.bf16 %v31_v14, %v27_v12  ;;  %v348_v18 = vpack.c.bf16 %v33_v16, %v29_v15  ;;  %v26_v19 = vld [vmem:[%s659_s0 + $0x40] sm:$0xff]  ;;  %v28_v21 = vld [vmem:[%s659_s0 + $0x50] sm:$0xff]  ;;  %v35_v24 = vld [vmem:[%s659_s0 + $0x88] sm:$0xff] }
   0x6   :  { %311 = vmatpush1.bf16.msra.mxu0 %v310_v9  ;;  %v30_v20 = vld [vmem:[%s659_s0 + $0x60] sm:$0xff]  ;;  %v32_v23 = vld [vmem:[%s659_s0 + $0x70] sm:$0xff]  ;;  %v39_v25 = vld [vmem:[%s659_s0 + $0xa8] sm:$0xff] }
   0x7   :  { %347 = vmatpush1.bf16.msra.mxu1 %v346_v13  ;;  %v314_v22 = vpack.c.bf16 %v30_v20, %v26_v19  ;;  %313 = vmatprep.subr.bf16.mxu0 %v312_v17  ;;  %v350_v26 = vpack.c.bf16 %v32_v23, %v28_v21  ;;  %v316_v27 = vpack.c.bf16 %v39_v25, %v35_v24  ;;  %v37_v28 = vld [vmem:[%s659_s0 + $0x98] sm:$0xff]  ;;  %v34_v30 = vld [vmem:[%s659_s0 + $0x80] sm:$0xff]  ;;  %v36_v33 = vld [vmem:[%s659_s0 + $0x90] sm:$0xff] }
   0x8   :  { %349 = vmatprep.subr.bf16.mxu1 %v348_v18  ;;  %v41_v29 = vld [vmem:[%s659_s0 + $0xb8] sm:$0xff]  ;;  %v38_v32 = vld [vmem:[%s659_s0 + $0xa0] sm:$0xff]  ;;  %v40_v34 = vld [vmem:[%s659_s0 + $0xb0] sm:$0xff] }
   0x9   :  { %v352_v31 = vpack.c.bf16 %v41_v29, %v37_v28  ;;  %v318_v35 = vpack.c.bf16 %v38_v32, %v34_v30  ;;  %v43_v36 = vld [vmem:[%s659_s0 + $0xc8] sm:$0xff]  ;;  %v45_v38 = vld [vmem:[%s659_s0 + $0xd8] sm:$0xff]  ;;  %v354_v39 = vpack.c.bf16 %v40_v34, %v36_v33  ;;  %v42_v42 = vld [vmem:[%s659_s0 + $0xc0] sm:$0xff] }
   0xa   :  { %315 = vmatpush1.bf16.msra.mxu0 %v314_v22  ;;  %v47_v37 = vld [vmem:[%s659_s0 + $0xe8] sm:$0xff]  ;;  %v49_v41 = vld [vmem:[%s659_s0 + $0xf8] sm:$0xff]  ;;  %v46_v43 = vld [vmem:[%s659_s0 + $0xe0] sm:$0xff] }
   0xb   :  { %351 = vmatpush1.bf16.msra.mxu1 %v350_v26  ;;  %317 = vmatprep.subr.bf16.mxu0 %v316_v27  ;;  %v320_v40 = vpack.c.bf16 %v47_v37, %v43_v36  ;;  %v356_v44 = vpack.c.bf16 %v49_v41, %v45_v38  ;;  %v44_v45 = vld [vmem:[%s659_s0 + $0xd0] sm:$0xff]  ;;  %v51_v47 = vld [vmem:[%s659_s0 + $0x108] sm:$0xff]  ;;  %v53_v49 = vld [vmem:[%s659_s0 + $0x118] sm:$0xff]  ;;  %v322_v51 = vpack.c.bf16 %v46_v43, %v42_v42 }
   0xc   :  { %353 = vmatprep.subr.bf16.mxu1 %v352_v31  ;;  %v48_v46 = vld [vmem:[%s659_s0 + $0xf0] sm:$0xff]  ;;  %v55_v48 = vld [vmem:[%s659_s0 + $0x128] sm:$0xff]  ;;  %v57_v50 = vld [vmem:[%s659_s0 + $0x138] sm:$0xff] }
   0xd   :  { %v358_v52 = vpack.c.bf16 %v48_v46, %v44_v45  ;;  %v324_v53 = vpack.c.bf16 %v55_v48, %v51_v47  ;;  %v50_v54 = vld [vmem:[%s659_s0 + $0x100] sm:$0xff]  ;;  %v52_v56 = vld [vmem:[%s659_s0 + $0x110] sm:$0xff]  ;;  %v360_v57 = vpack.c.bf16 %v57_v50, %v53_v49  ;;  %v59_v59 = vld [vmem:[%s659_s0 + $0x148] sm:$0xff] }
   0xe   :  { %319 = vmatpush1.bf16.msra.mxu0 %v318_v35  ;;  %v54_v55 = vld [vmem:[%s659_s0 + $0x120] sm:$0xff]  ;;  %v56_v58 = vld [vmem:[%s659_s0 + $0x130] sm:$0xff]  ;;  %v63_v60 = vld [vmem:[%s659_s0 + $0x168] sm:$0xff] }
   0xf   :  { %355 = vmatpush1.bf16.msra.mxu1 %v354_v39  ;;  %321 = vmatprep.subr.bf16.mxu0 %v320_v40  ;;  %v61_v61 = vld [vmem:[%s659_s0 + $0x158] sm:$0xff]  ;;  %v326_v63 = vpack.c.bf16 %v54_v55, %v50_v54  ;;  %v362_v0 = vpack.c.bf16 %v56_v58, %v52_v56  ;;  %v328_v1 = vpack.c.bf16 %v63_v60, %v59_v59  ;;  %v58_v2 = vld [vmem:[%s659_s0 + $0x140] sm:$0xff]  ;;  %v60_v4 = vld [vmem:[%s659_s0 + $0x150] sm:$0xff] }
  0x10   :  { %357 = vmatprep.subr.bf16.mxu1 %v356_v44  ;;  %v65_v62 = vld [vmem:[%s659_s0 + $0x178] sm:$0xff]  ;;  %v62_v3 = vld [vmem:[%s659_s0 + $0x160] sm:$0xff]  ;;  %v64_v6 = vld [vmem:[%s659_s0 + $0x170] sm:$0xff] }
  0x11   :  { %v364_v5 = vpack.c.bf16 %v65_v62, %v61_v61  ;;  %v67_v7 = vld [vmem:[%s659_s0 + $0x188] sm:$0xff]  ;;  %v69_v9 = vld [vmem:[%s659_s0 + $0x198] sm:$0xff]  ;;  %v330_v11 = vpack.c.bf16 %v62_v3, %v58_v2  ;;  %v366_v12 = vpack.c.bf16 %v64_v6, %v60_v4  ;;  %v66_v14 = vld [vmem:[%s659_s0 + $0x180] sm:$0xff] }
  0x12   :  { %323 = vmatpush1.bf16.msra.mxu0 %v322_v51  ;;  %v71_v8 = vld [vmem:[%s659_s0 + $0x1a8] sm:$0xff]  ;;  %v73_v10 = vld [vmem:[%s659_s0 + $0x1b8] sm:$0xff]  ;;  %v70_v15 = vld [vmem:[%s659_s0 + $0x1a0] sm:$0xff] }
  0x13   :  { %359 = vmatpush1.bf16.msra.mxu1 %v358_v52  ;;  %325 = vmatprep.subr.bf16.mxu0 %v324_v53  ;;  %v332_v13 = vpack.c.bf16 %v71_v8, %v67_v7  ;;  %v68_v16 = vld [vmem:[%s659_s0 + $0x190] sm:$0xff]  ;;  %v368_v17 = vpack.c.bf16 %v73_v10, %v69_v9  ;;  %v75_v19 = vld [vmem:[%s659_s0 + $0x1c8] sm:$0xff]  ;;  %v77_v21 = vld [vmem:[%s659_s0 + $0x1d8] sm:$0xff]  ;;  %v334_v23 = vpack.c.bf16 %v70_v15, %v66_v14 }
  0x14   :  { %361 = vmatprep.subr.bf16.mxu1 %v360_v57  ;;  %v72_v18 = vld [vmem:[%s659_s0 + $0x1b0] sm:$0xff]  ;;  %v79_v20 = vld [vmem:[%s659_s0 + $0x1e8] sm:$0xff]  ;;  %v81_v22 = vld [vmem:[%s659_s0 + $0x1f8] sm:$0xff] }
  0x15   :  { %v74_v24 = vld [vmem:[%s659_s0 + $0x1c0] sm:$0xff]  ;;  %v370_v26 = vpack.c.bf16 %v72_v18, %v68_v16  ;;  %v336_v27 = vpack.c.bf16 %v79_v20, %v75_v19  ;;  %v76_v28 = vld [vmem:[%s659_s0 + $0x1d0] sm:$0xff]  ;;  %v15_v30 = vld [vmem:[%s660_s1 + $0x8] sm:$0xff]  ;;  %v372_v31 = vpack.c.bf16 %v81_v22, %v77_v21 }
  0x16   :  { %327 = vmatpush1.bf16.msra.mxu0 %v326_v63  ;;  %v78_v25 = vld [vmem:[%s659_s0 + $0x1e0] sm:$0xff]  ;;  %v80_v29 = vld [vmem:[%s659_s0 + $0x1f0] sm:$0xff]  ;;  %v83_v32 = vld [vmem:[%s659_s0 + $0x208] sm:$0xff]  ;;  %302 = vmatprep.mubr.msk.f32.mxu0 %vm106_vm0, %v15_v30 }
  0x17   :  { %363 = vmatpush1.bf16.msra.mxu1 %v362_v0  ;;  %329 = vmatprep.subr.bf16.mxu0 %v328_v1  ;;  %v87_v33 = vld [vmem:[%s659_s0 + $0x228] sm:$0xff]  ;;  %v94_v34 = vld [vmem:[%s661_s2] sm:$0xff]  ;;  %v85_v35 = vld [vmem:[%s659_s0 + $0x218] sm:$0xff]  ;;  %v338_v37 = vpack.c.bf16 %v78_v25, %v74_v24  ;;  %v374_v39 = vpack.c.bf16 %v80_v29, %v76_v28 }
  0x18   :  { %365 = vmatprep.subr.bf16.mxu1 %v364_v5  ;;  %v89_v36 = vld [vmem:[%s659_s0 + $0x238] sm:$0xff]  ;;  %306 = vmatprep.mubr.msk.f32.mxu1 %vm106_vm0, %v15_v30  ;;  %v95_v38 = vld [vmem:[%s661_s2 + $0x8] sm:$0xff]  ;;  %v340_v40 = vpack.c.bf16 %v87_v33, %v83_v32  ;;  %v82_v41 = vld [vmem:[%s659_s0 + $0x200] sm:$0xff] }
  0x19   :  { %98 = vperm.xlu0 %381, %v94_v34   ;;  %v86_v42 = vld [vmem:[%s659_s0 + $0x220] sm:$0xff]  ;;  %v376_v43 = vpack.c.bf16 %v89_v36, %v85_v35  ;;  %v84_v44 = vld [vmem:[%s659_s0 + $0x210] sm:$0xff]  ;;  %v91_v48 = vld [vmem:[%s659_s0 + $0x248] sm:$0x3f] }
  0x1a   :  { %331 = vmatpush1.bf16.msra.mxu0 %v330_v11  ;;  %v88_v45 = vld [vmem:[%s659_s0 + $0x230] sm:$0xff]  ;;  %v342_v46 = vpack.c.bf16 %v86_v42, %v82_v41  ;;  %v93_v49 = vld [vmem:[%s659_s0 + $0x258] sm:$0x3f]  ;;  %v90_v50 = vld [vmem:[%s659_s0 + $0x240] sm:$0x3f] }
  0x1b   :  { %367 = vmatpush1.bf16.msra.mxu1 %v366_v12  ;;  %333 = vmatprep.subr.bf16.mxu0 %v332_v13  ;;  %v378_v47 = vpack.c.bf16 %v88_v45, %v84_v44  ;;  %v92_v51 = vld [vmem:[%s659_s0 + $0x250] sm:$0x3f]  ;;  %v14_v52 = vld [vmem:[%s660_s1] sm:$0xff]  ;;  %v17_v53 = vld [vmem:[%s660_s1 + $0x18] sm:$0xff] }
  0x1c   :  { %369 = vmatprep.subr.bf16.mxu1 %v368_v17  ;;  %v16_v54 = vld [vmem:[%s660_s1 + $0x10] sm:$0xff] }
  0x1d   :  { %103 = vperm.xlu0 %381, %v95_v38  }
  0x1e   :  { %335 = vmatpush1.bf16.msra.mxu0 %v334_v23 }
  0x1f   :  { %371 = vmatpush1.bf16.msra.mxu1 %v370_v26  ;;  %337 = vmatprep.subr.bf16.mxu0 %v336_v27 }
  0x20   :  { %373 = vmatprep.subr.bf16.mxu1 %v372_v31 }
  0x22   :  { %339 = vmatpush1.bf16.msra.mxu0 %v338_v37 }
  0x23   :  { %375 = vmatpush1.bf16.msra.mxu1 %v374_v39  ;;  %341 = vmatprep.subr.bf16.mxu0 %v340_v40 }
  0x24   :  { %377 = vmatprep.subr.bf16.mxu1 %v376_v43 }
  0x26   :  { %343 = vmatpush1.bf16.msra.mxu0 %v342_v46 }
  0x27   :  { %379 = vmatpush1.bf16.msra.mxu1 %v378_v47  ;;  %300 = vmatprep.subr.msk.mxu0 %vm113_vm1, %v91_v48 }
  0x28   :  { %304 = vmatprep.subr.msk.mxu1 %vm113_vm1, %v93_v49 }
  0x2a   :  { %301 = vmatpush1.msk.msra.mxu0 %vm113_vm1, %v90_v50 }
  0x2b   :  { %305 = vmatpush1.msk.msra.mxu1 %vm113_vm1, %v92_v51  ;;  %191 = vmatmul.mubr.f32.vlgmr.msra.gmra.mrb[0].mxu0 %v14_v52 }
  0x2c   :  { %268 = vmatmul.mubr.f32.vlgmr.msra.gmra.mrb[0].mxu1 %v14_v52  ;;  %303 = vmatprep.mubr.msk.f32.mxu0 %vm106_vm0, %v17_v53 }
  0x2d   :  { %307 = vmatprep.mubr.msk.f32.mxu1 %vm106_vm0, %v17_v53 }
  0x2f   :  { %197 = vmatmul.mubr.f32.gmra.mrb[2].mxu0 %v16_v54 }
  0x30   :  { %274 = vmatmul.mubr.f32.gmra.mrb[2].mxu1 %v16_v54 }
  0x98   :  { %v99_v55 = vpop.permute.xlu0 %98 }
  0x9c   :  { %v104_v2 = vpop.permute.xlu0 %103 }
  0xfe   :  { %v192_v56 = vpop.f32.mrb[0].mxu0 }
  0xff   :  { %v193_v57 = vadd.f32 %v192_v56, %v99_v55  ;;  %v269_v58 = vpop.f32.mrb[0].mxu1  ;;  %v194_v59 = vpop.f32.mrb[1].mxu0 }
 0x100   :  { %v270_v60 = vadd.f32 %v269_v58, %v99_v55  ;;  %v195_v61 = vadd.f32 %v194_v59, %v99_v55  ;;  %v271_v62 = vpop.f32.mrb[1].mxu1 }
 0x101   :  { %v280_v63 = vmax.f32 %v193_v57, 0.0  ;;  %v272_v0 = vadd.f32 %v271_v62, %v99_v55 }
 0x102   :  { %v282_v1 = vmax.f32 %v270_v60, 0.0  ;;  %v281_v3 = vmax.f32 %v195_v61, 0.0  ;;  %v198_v4 = vpop.f32.mrb[2].mxu0 }
 0x103   :  { %v283_v5 = vmax.f32 %v272_v0, 0.0  ;;  %v199_v6 = vadd.f32 %v198_v4, %v104_v2  ;;  %v275_v7 = vpop.f32.mrb[2].mxu1  ;;  %v200_v8 = vpop.f32.mrb[3].mxu0 }
 0x104   :  { %v288_v9 = vmax.f32 %v280_v63, %v281_v3  ;;  %v276_v10 = vadd.f32 %v275_v7, %v104_v2  ;;  %v201_v11 = vadd.f32 %v200_v8, %v104_v2  ;;  %v277_v12 = vpop.f32.mrb[3].mxu1 }
 0x105   :  { %v290_v13 = vmax.f32 %v282_v1, %v283_v5  ;;  %v284_v14 = vmax.f32 %v199_v6, 0.0  ;;  %v278_v15 = vadd.f32 %v277_v12, %v104_v2 }
 0x106   :  { %v286_v16 = vmax.f32 %v276_v10, 0.0  ;;  %v285_v17 = vmax.f32 %v201_v11, 0.0 }
 0x107   :  { %v292_v18 = vmax.f32 %v288_v9, %v290_v13  ;;  %v287_v19 = vmax.f32 %v278_v15, 0.0 }
 0x108   :  { %v289_v20 = vmax.f32 %v284_v14, %v285_v17 }
 0x109   :  { %294 = vst [vmem:[%s662_s3] sm:$0xff] %v292_v18  ;;  %v291_v21 = vmax.f32 %v286_v16, %v287_v19 }
 0x10b   :  { %v293_v22 = vmax.f32 %v289_v20, %v291_v21 }
 0x10d   :  { %295 = vst [vmem:[%s662_s3 + $0x8] sm:$0xff] %v293_v22 }

// kernel: lenet5_forward.5
= control target key start
LH: loop header
LB: loop body
LE: loop exit
PB: predicated region body
PF: predicated region fallthrough
CT: control target
= control target key end

     0   :  { %v712_v4 = vmov 0.0|0.0   ;;  %v713_v26 = vmov 1983009808   ;;  %v90_v28 = vlaneseq  ;;  %vm106_vm0 = vcmask 130048   ;;  %s1030_s0 = inlined_call_operand.vmem [shape: f32[2,400], index: 0, kind: input, shape index: {}]   ;;  %s1031_s1 = inlined_call_operand.vmem [shape: f32[400,120], index: 1, kind: input, shape index: {}]   ;;  %s1032_s2 = inlined_call_operand.vmem [shape: f32[1,120], index: 2, kind: input, shape index: {}]   ;;  %s1033_s3 = inlined_call_operand.vmem [shape: f32[120,84], index: 3, kind: input, shape index: {}]   ;;  %s1034_s4 = inlined_call_operand.vmem [shape: f32[1,84], index: 4, kind: input, shape index: {}]   ;;  %s1035_s5 = inlined_call_operand.vmem [shape: f32[84,10], index: 5, kind: input, shape index: {}]   ;;  %s1036_s6 = inlined_call_operand.vmem [shape: f32[1,10], index: 6, kind: input, shape index: {}]   ;;  %s1037_s7 = inlined_call_operand.hbm [shape: f32[2,10], index: 7, kind: output, shape index: {}]  }
   0x1   :  { %v44_v0 = vld [vmem:[%s1031_s1 + $0x80] sm:$0xff]  ;;  %v45_v1 = vld [vmem:[%s1031_s1 + $0x88] sm:$0xff]  ;;  %619 = vmatprep.subr.bf16.mxu1 %v712_v4  ;;  %v46_v10 = vld [vmem:[%s1031_s1 + $0x90] sm:$0xff]  ;;  %v88_v27 = vunpack.c.l.s4 %v713_v26 }
   0x2   :  { %v28_v2 = vld [vmem:[%s1031_s1] sm:$0xff]  ;;  %v587_v3 = vpack.c.bf16 %v45_v1, %v44_v0  ;;  %v29_v5 = vld [vmem:[%s1031_s1 + $0x8] sm:$0xff]  ;;  %v47_v11 = vld [vmem:[%s1031_s1 + $0x98] sm:$0xff]  ;;  %v91_v39 = vshrl.u32 %v90_v28, 7 }
   0x3   :  { %v60_v6 = vld [vmem:[%s1031_s1 + $0x100] sm:$0xff]  ;;  %v61_v7 = vld [vmem:[%s1031_s1 + $0x108] sm:$0xff]  ;;  %v589_v8 = vpack.c.bf16 %v29_v5, %v28_v2  ;;  %v30_v12 = vld [vmem:[%s1031_s1 + $0x10] sm:$0xff]  ;;  %v591_v13 = vpack.c.bf16 %v47_v11, %v46_v10  ;;  %v89_v38 = vunpack.c.0.s8 %v88_v27 }
   0x4   :  { %v620_v9 = vpack.c.bf16 %v61_v7, %v60_v6  ;;  %588 = vmatprep.subr.bf16.mxu0 %v587_v3  ;;  %v31_v14 = vld [vmem:[%s1031_s1 + $0x18] sm:$0xff]  ;;  %v62_v15 = vld [vmem:[%s1031_s1 + $0x110] sm:$0xff]  ;;  %v48_v19 = vld [vmem:[%s1031_s1 + $0xa0] sm:$0xff] }
   0x5   :  { %v63_v16 = vld [vmem:[%s1031_s1 + $0x118] sm:$0xff]  ;;  %590 = vmatpush3.bf16.msra.mxu0 %v589_v8  ;;  %v593_v17 = vpack.c.bf16 %v31_v14, %v30_v12  ;;  %v49_v20 = vld [vmem:[%s1031_s1 + $0xa8] sm:$0xff]  ;;  %v32_v21 = vld [vmem:[%s1031_s1 + $0x20] sm:$0xff]  ;;  %v92_v49 = vsub.s32 %v89_v38, %v91_v39 }
   0x6   :  { %621 = vmatpush1.bf16.msra.mxu1 %v620_v9  ;;  %v623_v18 = vpack.c.bf16 %v63_v16, %v62_v15  ;;  %592 = vmatprep.subr.bf16.mxu0 %v591_v13  ;;  %v595_v22 = vpack.c.bf16 %v49_v20, %v48_v19  ;;  %v33_v23 = vld [vmem:[%s1031_s1 + $0x28] sm:$0xff]  ;;  %v64_v24 = vld [vmem:[%s1031_s1 + $0x120] sm:$0xff]  ;;  %v50_v29 = vld [vmem:[%s1031_s1 + $0xb0] sm:$0xff] }
   0x7   :  { %622 = vmatprep.subr.bf16.mxu1 %v712_v4  ;;  %v65_v25 = vld [vmem:[%s1031_s1 + $0x128] sm:$0xff]  ;;  %v51_v30 = vld [vmem:[%s1031_s1 + $0xb8] sm:$0xff]  ;;  %v597_v31 = vpack.c.bf16 %v33_v23, %v32_v21  ;;  %v34_v33 = vld [vmem:[%s1031_s1 + $0x30] sm:$0xff] }
   0x8   :  { %v626_v32 = vpack.c.bf16 %v65_v25, %v64_v24  ;;  %v599_v34 = vpack.c.bf16 %v51_v30, %v50_v29  ;;  %v35_v35 = vld [vmem:[%s1031_s1 + $0x38] sm:$0xff]  ;;  %v66_v36 = vld [vmem:[%s1031_s1 + $0x130] sm:$0xff]  ;;  %v52_v40 = vld [vmem:[%s1031_s1 + $0xc0] sm:$0xff] }
   0x9   :  { %594 = vmatpush3.bf16.msra.mxu0 %v593_v17  ;;  %v67_v37 = vld [vmem:[%s1031_s1 + $0x138] sm:$0xff]  ;;  %v53_v41 = vld [vmem:[%s1031_s1 + $0xc8] sm:$0xff]  ;;  %v601_v42 = vpack.c.bf16 %v35_v35, %v34_v33  ;;  %v36_v44 = vld [vmem:[%s1031_s1 + $0x40] sm:$0xff] }
   0xa   :  { %624 = vmatpush1.bf16.msra.mxu1 %v623_v18  ;;  %596 = vmatprep.subr.bf16.mxu0 %v595_v22  ;;  %v629_v43 = vpack.c.bf16 %v67_v37, %v66_v36  ;;  %v603_v45 = vpack.c.bf16 %v53_v41, %v52_v40  ;;  %v37_v46 = vld [vmem:[%s1031_s1 + $0x48] sm:$0xff]  ;;  %v68_v47 = vld [vmem:[%s1031_s1 + $0x140] sm:$0xff]  ;;  %v54_v50 = vld [vmem:[%s1031_s1 + $0xd0] sm:$0xff] }
   0xb   :  { %625 = vmatprep.subr.bf16.mxu1 %v712_v4  ;;  %v69_v48 = vld [vmem:[%s1031_s1 + $0x148] sm:$0xff]  ;;  %v55_v51 = vld [vmem:[%s1031_s1 + $0xd8] sm:$0xff]  ;;  %v605_v52 = vpack.c.bf16 %v37_v46, %v36_v44  ;;  %v38_v54 = vld [vmem:[%s1031_s1 + $0x50] sm:$0xff] }
   0xc   :  { %v632_v53 = vpack.c.bf16 %v69_v48, %v68_v47  ;;  %v27_v55 = vld [vmem:[%s1030_s0] sm:$0xff]  ;;  %v607_v56 = vpack.c.bf16 %v55_v51, %v54_v50  ;;  %v39_v57 = vld [vmem:[%s1031_s1 + $0x58] sm:$0xff]  ;;  %v70_v58 = vld [vmem:[%s1031_s1 + $0x150] sm:$0xff] }
   0xd   :  { %598 = vmatpush3.bf16.msra.mxu0 %v597_v31  ;;  %v71_v59 = vld [vmem:[%s1031_s1 + $0x158] sm:$0xff]  ;;  %v86_v60 = vcombine.high %v27_v55, %v27_v55  ;;  %v93_v61 = vrot.slane %v27_v55, %v92_v49  ;;  %v56_v62 = vld [vmem:[%s1031_s1 + $0xe0] sm:$0xff]  ;;  %v57_v63 = vld [vmem:[%s1031_s1 + $0xe8] sm:$0xff]  ;;  %v609_v2 = vpack.c.bf16 %v39_v57, %v38_v54 }
   0xe   :  { %627 = vmatpush1.bf16.msra.mxu1 %v626_v32  ;;  %600 = vmatprep.subr.bf16.mxu0 %v599_v34  ;;  %v635_v3 = vpack.c.bf16 %v71_v59, %v70_v58  ;;  %v40_v5 = vld [vmem:[%s1031_s1 + $0x60] sm:$0xff] }
   0xf   :  { %628 = vmatprep.subr.bf16.mxu1 %v712_v4  ;;  %v101_v0 = vcombine.high %v93_v61, %v93_v61  ;;  %v100_v1 = vrot.slane %v86_v60, %v92_v49 }
  0x11   :  { %602 = vmatpush3.bf16.msra.mxu0 %v601_v42 }
  0x12   :  { %630 = vmatpush1.bf16.msra.mxu1 %v629_v43  ;;  %604 = vmatprep.subr.bf16.mxu0 %v603_v45 }
  0x13   :  { %631 = vmatprep.subr.bf16.mxu1 %v712_v4 }
  0x15   :  { %606 = vmatpush3.bf16.msra.mxu0 %v605_v52 }
  0x16   :  { %633 = vmatpush1.bf16.msra.mxu1 %v632_v53 }
  0x17   :  { %12 = vsyncpa [#allocation3], 0  ;;  %608 = vmatprep.subr.bf16.mxu0 %v607_v56  ;;  %634 = vmatprep.subr.bf16.mxu1 %v712_v4  ;;  %v611_v6 = vpack.c.bf16 %v57_v63, %v56_v62  ;;  %v41_v7 = vld [vmem:[%s1031_s1 + $0x68] sm:$0xff]  ;;  %v72_v8 = vld [vmem:[%s1031_s1 + $0x160] sm:$0xff]  ;;  %v102_v10 = vcombine.high %v100_v1, %v100_v1  ;;  %v714_v46 = vmov 0.0   ;;  %vm715_vm1 = vmmov 0  }
  0x18   :  { %v73_v9 = vld [vmem:[%s1031_s1 + $0x168] sm:$0xff]  ;;  %v58_v11 = vld [vmem:[%s1031_s1 + $0xf0] sm:$0xff]  ;;  %v59_v12 = vld [vmem:[%s1031_s1 + $0xf8] sm:$0xff]  ;;  %173 = vmatprep.mubr.f32.mxu0 %v101_v0  ;;  %v613_v13 = vpack.c.bf16 %v41_v7, %v40_v5  ;;  %vm272_vm2 = vcmask 982016   ;;  %vm369_vm3 = vcmask 1043456   ;;  %vm365_vm4 = vcmask 687104  }
  0x19   :  { %460 = vmatprep.mubr.msk.f32.mxu1 %vm106_vm0, %v102_v10  ;;  %610 = vmatpush3.bf16.msra.mxu0 %v609_v2  ;;  %v638_v14 = vpack.c.bf16 %v73_v9, %v72_v8  ;;  %v42_v15 = vld [vmem:[%s1031_s1 + $0x70] sm:$0xff]  ;;  %v615_v16 = vpack.c.bf16 %v59_v12, %v58_v11  ;;  %v43_v17 = vld [vmem:[%s1031_s1 + $0x78] sm:$0xff]  ;;  %v76_v22 = vld [vmem:[%s1031_s1 + $0x180] sm:$0xff]  ;;  %vm443_vm5 = vcmask 74752  }
  0x1a   :  { %636 = vmatpush1.bf16.msra.mxu1 %v635_v3  ;;  %612 = vmatprep.subr.bf16.mxu0 %v611_v6  ;;  %v74_v18 = vld [vmem:[%s1031_s1 + $0x170] sm:$0xff]  ;;  %v75_v19 = vld [vmem:[%s1031_s1 + $0x178] sm:$0xff]  ;;  %v617_v20 = vpack.c.bf16 %v43_v17, %v42_v15  ;;  %v77_v23 = vld [vmem:[%s1031_s1 + $0x188] sm:$0xff]  ;;  %s716_s1 = smov [#allocation2]  }
  0x1b   :  { %637 = vmatprep.subr.bf16.mxu1 %v712_v4  ;;  %v641_v21 = vpack.c.bf16 %v75_v19, %v74_v18  ;;  %v250_v24 = vld [vmem:[%s1033_s3] sm:$0xff]  ;;  %v251_v25 = vld [vmem:[%s1033_s3 + $0x8] sm:$0xff]  ;;  %v644_v26 = vpack.c.bf16 %v77_v23, %v76_v22  ;;  %v252_v28 = vld [vmem:[%s1033_s3 + $0x10] sm:$0xff]  ;;  %s451_s15 = sshll.u32 %s716_s1, 4  ;;  %s452_s15 = int_to_ptr.vmem [resolvable:$true] %s451_s15 }
  0x1c   :  { %v647_v27 = vpack.c.bf16 %v251_v25, %v250_v24  ;;  %v253_v29 = vld [vmem:[%s1033_s3 + $0x18] sm:$0xff]  ;;  %v254_v31 = vld [vmem:[%s1033_s3 + $0x20] sm:$0xff]  ;;  %v255_v32 = vld [vmem:[%s1033_s3 + $0x28] sm:$0xff]  ;;  %p693_p1 = scmp.lt.s32.totalorder %s452_s15, %s452_s15 }
  0x1d   :  { %614 = vmatpush3.bf16.msra.mxu0 %v613_v13  ;;  %v650_v30 = vpack.c.bf16 %v253_v29, %v252_v28  ;;  %v653_v33 = vpack.c.bf16 %v255_v32, %v254_v31  ;;  %v256_v34 = vld [vmem:[%s1033_s3 + $0x30] sm:$0xff]  ;;  %v257_v35 = vld [vmem:[%s1033_s3 + $0x38] sm:$0xff]  ;;  %v258_v37 = vld [vmem:[%s1033_s3 + $0x40] sm:$0xff] }
  0x1e   :  { %639 = vmatpush1.bf16.msra.mxu1 %v638_v14  ;;  %616 = vmatprep.subr.bf16.mxu0 %v615_v16  ;;  %v656_v36 = vpack.c.bf16 %v257_v35, %v256_v34  ;;  %v259_v38 = vld [vmem:[%s1033_s3 + $0x48] sm:$0xff]  ;;  %v260_v40 = vld [vmem:[%s1033_s3 + $0x50] sm:$0xff]  ;;  %v261_v41 = vld [vmem:[%s1033_s3 + $0x58] sm:$0xff] }
  0x1f   :  { %640 = vmatprep.subr.bf16.mxu1 %v712_v4  ;;  %v659_v39 = vpack.c.bf16 %v259_v38, %v258_v37  ;;  %v662_v42 = vpack.c.bf16 %v261_v41, %v260_v40  ;;  %v262_v43 = vld [vmem:[%s1033_s3 + $0x60] sm:$0xff]  ;;  %v263_v44 = vld [vmem:[%s1033_s3 + $0x68] sm:$0xff]  ;;  %v264_v47 = vld [vmem:[%s1033_s3 + $0x70] sm:$0xff] }
  0x20   :  { %v665_v45 = vpack.c.bf16 %v263_v44, %v262_v43  ;;  %v347_v48 = vld [vmem:[%s1035_s5] sm:$0xff]  ;;  %v348_v49 = vld [vmem:[%s1035_s5 + $0x8] sm:$0xff]  ;;  %v349_v50 = vld [vmem:[%s1035_s5 + $0x10] sm:$0xff] }
  0x21   :  { %618 = vmatpush3.bf16.msra.mxu0 %v617_v20  ;;  %v668_v51 = vpack.c.bf16 %v348_v49, %v347_v48  ;;  %v350_v52 = vld [vmem:[%s1035_s5 + $0x18] sm:$0xff]  ;;  %v351_v54 = vld [vmem:[%s1035_s5 + $0x20] sm:$0xff]  ;;  %v352_v55 = vld [vmem:[%s1035_s5 + $0x28] sm:$0xff] }
  0x22   :  { %642 = vmatpush1.bf16.msra.mxu1 %v641_v21  ;;  %646 = vmatprep.subr.bf16.mxu0 %v712_v4  ;;  %v671_v53 = vpack.c.bf16 %v350_v52, %v349_v50  ;;  %v674_v56 = vpack.c.bf16 %v352_v55, %v351_v54  ;;  %v353_v57 = vld [vmem:[%s1035_s5 + $0x30] sm:$0xff]  ;;  %v354_v58 = vld [vmem:[%s1035_s5 + $0x38] sm:$0xff]  ;;  %v459_v62 = vld [vmem:[%s1032_s2] ss:$0 sm:$0xff] }
  0x23   :  { %643 = vmatprep.subr.bf16.mxu1 %v712_v4  ;;  %v677_v59 = vpack.c.bf16 %v354_v58, %v353_v57  ;;  %v355_v6 = vld [vmem:[%s1035_s5 + $0x40] sm:$0xff]  ;;  %v357_v8 = vld [vmem:[%s1035_s5 + $0x50] sm:$0xf] }
  0x24   :  { %174 = vmatmul.mubr.f32.vlgmr.msra.gmra.mrb[0].mxu0 %v93_v61  ;;  %v461_v9 = vld [vmem:[%s1034_s4] ss:$0 sm:$0xff] }
  0x25   :  { %648 = vmatpush3.bf16.msra.mxu0 %v647_v27  ;;  %559 = vmatprep.mubr.msk.f32.mxu0 %vm715_vm1, %v714_v46  ;;  %v463_v14 = vld [vmem:[%s1036_s6] ss:$0 sm:$0xff] }
  0x26   :  { %645 = vmatpush1.bf16.msra.mxu1 %v644_v26  ;;  %649 = vmatprep.subr.bf16.mxu0 %v712_v4 }
  0x27   :  { %667 = vmatprep.subr.bf16.mxu1 %v712_v4 }
  0x29   :  { %244 = vmatmul.mubr.f32.vlgmr.msra.gmra.mrb[0].mxu1 %v100_v1  ;;  %651 = vmatpush3.bf16.msra.mxu0 %v650_v30 }
  0x2a   :  { %652 = vmatprep.subr.bf16.mxu0 %v712_v4  ;;  %584 = vmatprep.mubr.msk.f32.mxu1 %vm715_vm1, %v714_v46 }
  0x2b   :  { %669 = vmatpush3.bf16.msra.mxu1 %v668_v51 }
  0x2c   :  { %670 = vmatprep.subr.bf16.mxu1 %v712_v4 }
  0x2d   :  { %654 = vmatpush3.bf16.msra.mxu0 %v653_v33 }
  0x2e   :  { %655 = vmatprep.subr.bf16.mxu0 %v712_v4 }
  0x2f   :  { %672 = vmatpush3.bf16.msra.mxu1 %v671_v53 }
  0x30   :  { %673 = vmatprep.subr.bf16.mxu1 %v712_v4 }
  0x31   :  { %657 = vmatpush3.bf16.msra.mxu0 %v656_v36 }
  0x32   :  { %658 = vmatprep.subr.bf16.mxu0 %v712_v4 }
  0x33   :  { %675 = vmatpush3.bf16.msra.mxu1 %v674_v56 }
  0x34   :  { %676 = vmatprep.subr.bf16.mxu1 %v712_v4 }
  0x35   :  { %660 = vmatpush3.bf16.msra.mxu0 %v659_v39 }
  0x36   :  { %661 = vmatprep.subr.bf16.mxu0 %v712_v4 }
  0x37   :  { %678 = vmatpush3.bf16.msra.mxu1 %v677_v59 }
  0x38   :  { %679 = vmatprep.subr.bf16.mxu1 %v712_v4 }
  0x39   :  { %663 = vmatpush3.bf16.msra.mxu0 %v662_v42 }
  0x3a   :  { %664 = vmatprep.subr.bf16.mxu0 %v712_v4  ;;  %v356_v4 = vld [vmem:[%s1035_s5 + $0x48] sm:$0xff]  ;;  %s688_s5 = scalar_lea.vmem %s452_s15, 32 }
  0x3b   :  { %v680_v7 = vpack.c.bf16 %v356_v4, %v355_v6  ;;  %p689_p0 = scmp.ne.s32.totalorder %s452_s15, %s688_s5  ;;  %p694_p2 = scmp.lt.s32.totalorder %s688_s5, %s688_s5 }
  0x3d   :  { %666 = vmatpush3.bf16.msra.mxu0 %v665_v45  ;;  %681 = vmatpush3.bf16.msra.mxu1 %v680_v7  ;;  %p695_p3 = por %p694_p2, %p693_p1 }
  0x3e   :  { %557 = vmatprep.subr.mxu0 %v714_v46  ;;  %582 = vmatprep.subr.mxu1 %v714_v46 }
  0x3f   :  { %p696_p4 = pnand %p695_p3, %p689_p0 }
  0x41   :  { %558 = vmatpush3.msra.mxu0 %v264_v47  ;;  %583 = vmatpush3.msk.msra.mxu1 %vm369_vm3, %v357_v8 }
  0xf7   :  { %v498_v60 = vpop.f32.mrb[0].mxu0 }
  0xf8   :  { %v499_v61 = vpop.f32.mrb[1].mxu0 }
  0xf9   :  { %v500_v63 = vadd.f32 %v499_v61, %v498_v60 }
  0xfb   :  { %v176_v0 = vadd.f32 %v500_v63, %v459_v62 }
  0xfc   :  { %v245_v1 = vpop.f32.mrb[0].mxu1 }
  0xfd   :  { %v247_v2 = vpop.f32.mrb[1].mxu1  ;;  %v246_v3 = vadd.f32 %v245_v1, %v176_v0 }
  0xff   :  { %v249_v5 = vmax.f32 %v246_v3, 0.0 }
 0x101   :  { %560 = vmatmul.mubr.msk.f32.vlgmr.msra.gmra.mrb[2].mxu0 %vm272_vm2, %v249_v5 }
 0x1d4   :  { %v342_v10 = vpop.f32.mrb[2].mxu0 }
 0x1d5   :  { %v343_v11 = vadd.f32 %v461_v9, %v342_v10  ;;  %v561_v12 = vpop.f32.mrb[3].mxu0 }
 0x1d7   :  { %v346_v13 = vmax.f32 %v343_v11, 0.0 }
 0x1d9   :  { %585 = vmatmul.mubr.msk.f32.vlgmr.msra.gmra.mrb[2].mxu1 %vm365_vm4, %v346_v13 }
 0x2ac   :  { %v439_v15 = vpop.f32.mrb[2].mxu1 }
 0x2ad   :  { %v440_v16 = vadd.f32 %v463_v14, %v439_v15  ;;  %v586_v17 = vpop.f32.mrb[3].mxu1 }
 0x2af   :  { %444 = vst.msk [vmem:[#allocation2] sm:$0x3] %vm443_vm5, %v440_v16 }
 0x2b0   :  { %699 = shalt.err (!%p696_p4)
}
 0x2b1   :  { %s700_s17 = scalar_lea.hbm %s1037_s7, 32 }
 0x2b2   :  { %p701_p5 = scmp.ne.s32.totalorder %s1037_s7, %s700_s17  ;;  %p704_p6 = scmp.lt.u32.totalorder %s700_s17, %s1037_s7 }
 0x2b4   :  { %p706_p7 = pnand %p704_p6, %p701_p5 }
 0x2b6   :  { %709 = shalt.err (!%p706_p7)
}
 0x2b7   :  { %454 = dma.vmem_to_hbm [thread:$0]  %s452_s15, 32, %s1037_s7, [#allocation3]  }
 0x2b8   :  { %710 = dma.done.wait [#allocation3], 32  }
 0x2b9   :  { %711 = vsyncadd [#allocation3], 4294967264 }
 0x2ba   :  { %458 = vsyncpa [#allocation3], 1 }

</bundles_post_ra>
